<compile_context>
chip_gen: v5e
topology: v5e:2x2
jax: 0.10.0
libtpu: 0.0.40
codegen_flags: <defaults>
</compile_context>

<pallas_src>
import functools

import jax
import jax.numpy as jnp
from jax.experimental import pallas as pl
from jax.experimental.pallas import tpu as pltpu

D_MODEL = 32
N_HEADS = 4          # "d_head" arg of MultiHeadedAttention is the head count h
D_FF = 64
EPS = 1e-6
NEG_INF = -1e9


# ----------------------------------------------------------------------------
# Kernel helpers
# ----------------------------------------------------------------------------
def _centered_norm(x):
    # (x - mean) / (std + eps) with unbiased std (ddof=1); gamma/beta are
    # folded into the downstream linear layer host-side.
    d = x.shape[-1]
    mean = jnp.mean(x, axis=-1, keepdims=True)
    var = jnp.sum((x - mean) ** 2, axis=-1, keepdims=True) / (d - 1)
    return (x - mean) / (jnp.sqrt(var) + EPS)


def _softmax_ctx(s, v):
    # s: (Tq, Tk) raw scores (scale/mask already applied), v: (Tk, dk).
    s = s - jnp.max(s, axis=-1, keepdims=True)
    e = jnp.exp(s)
    # exact reciprocal kept: numerically safe w.r.t. the 1e-4 tolerance
    p = e * pl.reciprocal(jnp.sum(e, axis=-1, keepdims=True), approx=False)
    return jnp.dot(p, v, preferred_element_type=jnp.float32)


# ----------------------------------------------------------------------------
# Fused decoder-layer kernel (single invocation, no grid)
# ----------------------------------------------------------------------------
def _decoder_layer_kernel(x_ref, mem_ref, mask_ref,
                          w_sa_qkv_ref, w_sa_o_ref,
                          w_ca_q_ref, w_ca_kv_ref, w_ca_o_ref,
                          w_ff1_ref, w_ff2_ref, bias_ref,
                          out_ref, *, n_heads, batch, t_q, t_kv):
    d = x_ref.shape[-1]
    dff = w_ff1_ref.shape[-1]
    dk = d // n_heads

    # --- unpack the packed bias slab (LN gamma/beta + 1/sqrt(dk) pre-folded) --
    b_sa_qkv = bias_ref[0:1, :3 * d]
    b_sa_o   = bias_ref[1:2, :d]
    b_ca_q   = bias_ref[2:3, :d]
    b_ca_kv  = bias_ref[3:4, :2 * d]
    b_ca_o   = bias_ref[4:5, :d]
    b_ff1    = bias_ref[5:6, :dff]
    b_ff2    = bias_ref[6:7, :d]

    x = x_ref[...]            # (B*Tq, D) slab, resident across all sublayers
    mem = mem_ref[...]        # (B*Tk, D) slab

    # ---- sublayer 0: self-attention (fused, scaled, LN-folded QKV proj) ----
    xn = _centered_norm(x)
    qkv = jnp.dot(xn, w_sa_qkv_ref[...],
                  preferred_element_type=jnp.float32) + b_sa_qkv   # (B*Tq, 3D)
    ctx_rows = []
    for b in range(batch):                         # static, batch is tiny
        rows = slice(b * t_q, (b + 1) * t_q)
        qb = qkv[rows, 0:d]
        kb = qkv[rows, d:2 * d]
        vb = qkv[rows, 2 * d:3 * d]
        madd = mask_ref[b]                          # (Tq, Tq) additive 0/-1e9
        heads = []
        for h in range(n_heads):                    # static, n_heads = 4
            cs = slice(h * dk, (h + 1) * dk)
            s = jnp.dot(qb[:, cs], kb[:, cs].T,
                        preferred_element_type=jnp.float32) + madd
            heads.append(_softmax_ctx(s, vb[:, cs]))
        ctx_rows.append(jnp.concatenate(heads, axis=-1))           # (Tq, D)
    ctx = jnp.concatenate(ctx_rows, axis=0)                        # (B*Tq, D)
    x = x + jnp.dot(ctx, w_sa_o_ref[...],
                    preferred_element_type=jnp.float32) + b_sa_o

    # ---- sublayer 1: cross-attention, no mask (fused KV proj, raw memory) ---
    xn = _centered_norm(x)
    q = jnp.dot(xn, w_ca_q_ref[...],
                preferred_element_type=jnp.float32) + b_ca_q        # (B*Tq, D)
    kv = jnp.dot(mem, w_ca_kv_ref[...],
                 preferred_element_type=jnp.float32) + b_ca_kv      # (B*Tk, 2D)
    ctx_rows = []
    for b in range(batch):
        qrows = slice(b * t_q, (b + 1) * t_q)
        krows = slice(b * t_kv, (b + 1) * t_kv)
        qb = q[qrows]
        kb = kv[krows, 0:d]
        vb = kv[krows, d:2 * d]
        heads = []
        for h in range(n_heads):
            cs = slice(h * dk, (h + 1) * dk)
            s = jnp.dot(qb[:, cs], kb[:, cs].T,
                        preferred_element_type=jnp.float32)
            heads.append(_softmax_ctx(s, vb[:, cs]))
        ctx_rows.append(jnp.concatenate(heads, axis=-1))
    ctx = jnp.concatenate(ctx_rows, axis=0)                        # (B*Tq, D)
    x = x + jnp.dot(ctx, w_ca_o_ref[...],
                    preferred_element_type=jnp.float32) + b_ca_o

    # ---- sublayer 2: position-wise FFN (LN2 folded into w_ff1/b_ff1) -------
    xn = _centered_norm(x)
    hdn = jnp.maximum(
        jnp.dot(xn, w_ff1_ref[...], preferred_element_type=jnp.float32)
        + b_ff1, 0.0)
    x = x + jnp.dot(hdn, w_ff2_ref[...],
                    preferred_element_type=jnp.float32) + b_ff2

    out_ref[...] = x.astype(out_ref.dtype)          # single (B*Tq, D) store


# ----------------------------------------------------------------------------
# Host-side parameter packing / folding (done once, outside the hot path)
# ----------------------------------------------------------------------------
def pack_decoder_params(params):
    sa, ca, ff = params["self_attn"], params["src_attn"], params["ffn"]
    ln0, ln1, ln2 = params["ln0"], params["ln1"], params["ln2"]
    d = sa["wq"].shape[0]
    dff = ff["w1"].shape[1]
    dk = d // N_HEADS
    scale = 1.0 / jnp.sqrt(jnp.float32(dk))

    def fold_ln(ln, w, b):
        # (gamma*xc + beta) @ W + b  ==  xc @ (diag(gamma)@W) + (beta@W + b)
        return ln["gamma"].reshape(-1, 1) * w, ln["beta"] @ w + b

    # self-attn: fuse Q|K|V, fold 1/sqrt(dk) into Q columns, fold LN0
    w_sa_qkv = jnp.concatenate([sa["wq"] * scale, sa["wk"], sa["wv"]], axis=1)
    b_sa_qkv = jnp.concatenate([sa["bq"] * scale, sa["bk"], sa["bv"]], axis=1)
    w_sa_qkv, b_sa_qkv = fold_ln(ln0, w_sa_qkv, b_sa_qkv)

    # cross-attn: fold LN1 + scale into Q only; K/V see the raw memory
    w_ca_q, b_ca_q = fold_ln(ln1, ca["wq"] * scale, ca["bq"] * scale)
    w_ca_kv = jnp.concatenate([ca["wk"], ca["wv"]], axis=1)
    b_ca_kv = jnp.concatenate([ca["bk"], ca["bv"]], axis=1)

    # FFN: fold LN2 into the first linear
    w_ff1, b_ff1 = fold_ln(ln2, ff["w1"], ff["b1"])

    width = max(3 * d, dff)

    def row(v):
        v = v.reshape(1, -1)
        return jnp.pad(v, ((0, 0), (0, width - v.shape[1])))

    bias_pack = jnp.concatenate([
        row(b_sa_qkv),       # (1, 3D)
        row(sa["bo"]),
        row(b_ca_q),
        row(b_ca_kv),        # (1, 2D)
        row(ca["bo"]),
        row(b_ff1),
        row(ff["b2"]),
    ], axis=0)               # (7, W)

    return dict(
        w_sa_qkv=w_sa_qkv, w_sa_o=sa["wo"],
        w_ca_q=w_ca_q, w_ca_kv=w_ca_kv, w_ca_o=ca["wo"],
        w_ff1=w_ff1, w_ff2=ff["w2"],
        bias=bias_pack,
    )


# ----------------------------------------------------------------------------
# Wrapper: one fused pallas_call, everything resident in VMEM
# ----------------------------------------------------------------------------
@jax.jit
def decoder_layer(x, memory, smi_mask, packed):
    """Pallas implementation of DecoderLayer.forward (dropout = eval mode)."""
    B, Tq, D = x.shape
    Tk = memory.shape[1]

    # Batched slabs: projections / FFN run once over B*T rows.
    x2 = x.reshape(B * Tq, D)
    mem2 = memory.reshape(B * Tk, D)
    # Mask as an additive bias (0 keep / -1e9 masked), computed once.
    mask_add = jnp.where(smi_mask == 0, jnp.float32(NEG_INF), jnp.float32(0.0))

    kernel = functools.partial(_decoder_layer_kernel, n_heads=N_HEADS,
                               batch=B, t_q=Tq, t_kv=Tk)
    vmem = pl.BlockSpec(memory_space=pltpu.MemorySpace.VMEM)
    out2 = pl.pallas_call(
        kernel,
        out_shape=jax.ShapeDtypeStruct((B * Tq, D), x.dtype),
        in_specs=[vmem] * 11,
        out_specs=vmem,
    )(x2, mem2, mask_add,
      packed["w_sa_qkv"], packed["w_sa_o"],
      packed["w_ca_q"], packed["w_ca_kv"], packed["w_ca_o"],
      packed["w_ff1"], packed["w_ff2"], packed["bias"])
    return out2.reshape(B, Tq, D)


# ----------------------------------------------------------------------------
# Pure-JAX reference (correctness sanity check)
# ----------------------------------------------------------------------------
def _ref_ln(x, g, b):
    d = x.shape[-1]
    mean = x.mean(-1, keepdims=True)
    var = ((x - mean) ** 2).sum(-1, keepdims=True) / (d - 1)
    return g * (x - mean) / (jnp.sqrt(var) + EPS) + b


def _ref_mha(q_in, kv_in, mask, p):
    B, Tq, D = q_in.shape
    Tk = kv_in.shape[1]
    dk = D // N_HEADS
    q = (q_in @ p["wq"] + p["bq"]).reshape(B, Tq, N_HEADS, dk).transpose(0, 2, 1, 3)
    k = (kv_in @ p["wk"] + p["bk"]).reshape(B, Tk, N_HEADS, dk).transpose(0, 2, 1, 3)
    v = (kv_in @ p["wv"] + p["bv"]).reshape(B, Tk, N_HEADS, dk).transpose(0, 2, 1, 3)
    scores = jnp.einsum("bhqd,bhkd->bhqk", q, k) / jnp.sqrt(jnp.float32(dk))
    if mask is not None:
        scores = jnp.where(mask[:, None, :, :] == 0, NEG_INF, scores)
    pattn = jax.nn.softmax(scores, axis=-1)
    ctx = jnp.einsum("bhqk,bhkd->bhqd", pattn, v)
    ctx = ctx.transpose(0, 2, 1, 3).reshape(B, Tq, D)
    return ctx @ p["wo"] + p["bo"]


def decoder_layer_ref(x, memory, smi_mask, params):
    xn = _ref_ln(x, params["ln0"]["gamma"], params["ln0"]["beta"])
    x = x + _ref_mha(xn, xn, smi_mask, params["self_attn"])
    xn = _ref_ln(x, params["ln1"]["gamma"], params["ln1"]["beta"])
    x = x + _ref_mha(xn, memory, None, params["src_attn"])
    xn = _ref_ln(x, params["ln2"]["gamma"], params["ln2"]["beta"])
    h = jnp.maximum(xn @ params["ffn"]["w1"] + params["ffn"]["b1"], 0.0)
    return x + (h @ params["ffn"]["w2"] + params["ffn"]["b2"])


# ----------------------------------------------------------------------------
# Deterministic parameter init
# ----------------------------------------------------------------------------
def make_params(key):
    keys = jax.random.split(key, 16)
    it = iter(keys)

    def lin(k, din, dout):
        return (0.1 * jax.random.normal(k, (din, dout), jnp.float32),
                0.05 * jax.random.normal(jax.random.fold_in(k, 1), (1, dout),
                                         jnp.float32))

    def mha(k):
        ks = jax.random.split(k, 4)
        wq, bq = lin(ks[0], D_MODEL, D_MODEL)
        wk, bk = lin(ks[1], D_MODEL, D_MODEL)
        wv, bv = lin(ks[2], D_MODEL, D_MODEL)
        wo, bo = lin(ks[3], D_MODEL, D_MODEL)
        return dict(wq=wq, bq=bq, wk=wk, bk=bk, wv=wv, bv=bv, wo=wo, bo=bo)

    def ln(k):
        # non-trivial gamma/beta so the host-side LN fold is actually exercised
        return dict(
            gamma=1.0 + 0.1 * jax.random.normal(k, (1, D_MODEL), jnp.float32),
            beta=0.05 * jax.random.normal(jax.random.fold_in(k, 1),
                                          (1, D_MODEL), jnp.float32))

    w1, b1 = lin(next(it), D_MODEL, D_FF)
    w2, b2 = lin(next(it), D_FF, D_MODEL)
    return dict(self_attn=mha(next(it)),
                src_attn=mha(next(it)),
                ffn=dict(w1=w1, b1=b1, w2=w2, b2=b2),
                ln0=ln(next(it)), ln1=ln(next(it)), ln2=ln(next(it)))


# ----------------------------------------------------------------------------
if __name__ == "__main__":
    key = jax.random.PRNGKey(0)
    k_x, k_m, k_p = jax.random.split(key, 3)

    B, T_TGT, T_MEM = 2, 8, 12
    x = jax.random.normal(k_x, (B, T_TGT, D_MODEL), jnp.float32)
    memory = jax.random.normal(k_m, (B, T_MEM, D_MODEL), jnp.float32)
    # causal self-attention mask (1 = attend, 0 = masked)
    smi_mask = jnp.tril(jnp.ones((T_TGT, T_TGT), jnp.float32))
    smi_mask = jnp.broadcast_to(smi_mask, (B, T_TGT, T_TGT))

    params = make_params(k_p)
    packed = pack_decoder_params(params)   # one-time host-side weight folding

    out = decoder_layer(x, memory, smi_mask, packed)
    out = jax.block_until_ready(out)

    ref = decoder_layer_ref(x, memory, smi_mask, params)
    assert out.shape == (B, T_TGT, D_MODEL)
    assert jnp.allclose(out, ref, rtol=1e-4, atol=1e-4), (
        float(jnp.max(jnp.abs(out - ref))))

    print("KERNEL_OK")
</pallas_src>

<mosaic_0001>
module attributes {stable_mosaic.version = 11 : i64} {
  func.func @_decoder_layer_kernel(%arg0: memref<16x32xf32, #tpu.memory_space<vmem>>, %arg1: memref<24x32xf32, #tpu.memory_space<vmem>>, %arg2: memref<2x8x8xf32, #tpu.memory_space<vmem>>, %arg3: memref<32x96xf32, #tpu.memory_space<vmem>>, %arg4: memref<32x32xf32, #tpu.memory_space<vmem>>, %arg5: memref<32x32xf32, #tpu.memory_space<vmem>>, %arg6: memref<32x64xf32, #tpu.memory_space<vmem>>, %arg7: memref<32x32xf32, #tpu.memory_space<vmem>>, %arg8: memref<32x64xf32, #tpu.memory_space<vmem>>, %arg9: memref<64x32xf32, #tpu.memory_space<vmem>>, %arg10: memref<7x96xf32, #tpu.memory_space<vmem>>, %arg11: memref<16x32xf32, #tpu.memory_space<vmem>>) attributes {dimension_semantics = [], scalar_prefetch = 0 : i64, scratch_operands = 0 : i64, tpu.core_type = #tpu.core_type<tc>} {
    %c0 = arith.constant 0 : index
    %c0_0 = arith.constant 0 : index
    %0 = vector.load %arg10[%c0, %c0_0] : memref<7x96xf32, #tpu.memory_space<vmem>>, vector<1x96xf32>
    %c1 = arith.constant 1 : index
    %c0_1 = arith.constant 0 : index
    %1 = vector.load %arg10[%c1, %c0_1] : memref<7x96xf32, #tpu.memory_space<vmem>>, vector<1x32xf32>
    %c2 = arith.constant 2 : index
    %c0_2 = arith.constant 0 : index
    %2 = vector.load %arg10[%c2, %c0_2] : memref<7x96xf32, #tpu.memory_space<vmem>>, vector<1x32xf32>
    %c3 = arith.constant 3 : index
    %c0_3 = arith.constant 0 : index
    %3 = vector.load %arg10[%c3, %c0_3] : memref<7x96xf32, #tpu.memory_space<vmem>>, vector<1x64xf32>
    %c4 = arith.constant 4 : index
    %c0_4 = arith.constant 0 : index
    %4 = vector.load %arg10[%c4, %c0_4] : memref<7x96xf32, #tpu.memory_space<vmem>>, vector<1x32xf32>
    %c5 = arith.constant 5 : index
    %c0_5 = arith.constant 0 : index
    %5 = vector.load %arg10[%c5, %c0_5] : memref<7x96xf32, #tpu.memory_space<vmem>>, vector<1x64xf32>
    %c6 = arith.constant 6 : index
    %c0_6 = arith.constant 0 : index
    %6 = vector.load %arg10[%c6, %c0_6] : memref<7x96xf32, #tpu.memory_space<vmem>>, vector<1x32xf32>
    %c0_7 = arith.constant 0 : index
    %c0_8 = arith.constant 0 : index
    %7 = vector.load %arg0[%c0_7, %c0_8] : memref<16x32xf32, #tpu.memory_space<vmem>>, vector<16x32xf32>
    %c0_9 = arith.constant 0 : index
    %c0_10 = arith.constant 0 : index
    %8 = vector.load %arg1[%c0_9, %c0_10] : memref<24x32xf32, #tpu.memory_space<vmem>>, vector<24x32xf32>
    %cst = arith.constant dense<0.000000e+00> : vector<16xf32>
    %9 = vector.multi_reduction <add>, %7, %cst [1] : vector<16x32xf32> to vector<16xf32>
    %10 = vector.shape_cast %9 : vector<16xf32> to vector<16x1xf32>
    %cst_11 = arith.constant 3.200000e+01 : f32
    %11 = vector.broadcast %cst_11 : f32 to vector<16x1xf32>
    %12 = arith.divf %10, %11 : vector<16x1xf32>
    %13 = vector.broadcast %12 : vector<16x1xf32> to vector<16x32xf32>
    %14 = arith.subf %7, %13 : vector<16x32xf32>
    %15 = arith.mulf %14, %14 : vector<16x32xf32>
    %cst_12 = arith.constant dense<0.000000e+00> : vector<16xf32>
    %16 = vector.multi_reduction <add>, %15, %cst_12 [1] : vector<16x32xf32> to vector<16xf32>
    %17 = vector.shape_cast %16 : vector<16xf32> to vector<16x1xf32>
    %cst_13 = arith.constant 3.100000e+01 : f32
    %18 = vector.broadcast %cst_13 : f32 to vector<16x1xf32>
    %19 = arith.divf %17, %18 : vector<16x1xf32>
    %20 = vector.broadcast %12 : vector<16x1xf32> to vector<16x32xf32>
    %21 = arith.subf %7, %20 : vector<16x32xf32>
    %22 = math.sqrt %19 : vector<16x1xf32>
    %cst_14 = arith.constant 9.99999997E-7 : f32
    %23 = vector.broadcast %cst_14 : f32 to vector<16x1xf32>
    %24 = arith.addf %22, %23 : vector<16x1xf32>
    %25 = vector.broadcast %24 : vector<16x1xf32> to vector<16x32xf32>
    %26 = arith.divf %21, %25 : vector<16x32xf32>
    %c0_15 = arith.constant 0 : index
    %c0_16 = arith.constant 0 : index
    %27 = vector.load %arg3[%c0_15, %c0_16] : memref<32x96xf32, #tpu.memory_space<vmem>>, vector<32x96xf32>
    %cst_17 = arith.constant dense<0.000000e+00> : vector<16x96xf32>
    %28 = tpu.matmul %26, %27, %cst_17 {dimension_numbers = #tpu.dot_dimension_numbers<[1], [0], [0], [1], [0, 0, 1, 1], [], []>} : vector<16x32xf32>, vector<32x96xf32>, vector<16x96xf32> -> vector<16x96xf32>
    %29 = vector.broadcast %0 : vector<1x96xf32> to vector<16x96xf32>
    %30 = arith.addf %28, %29 : vector<16x96xf32>
    %31 = vector.extract_strided_slice %30 {offsets = [0, 0], sizes = [8, 32], strides = [1, 1]} : vector<16x96xf32> to vector<8x32xf32>
    %32 = vector.extract_strided_slice %30 {offsets = [0, 32], sizes = [8, 32], strides = [1, 1]} : vector<16x96xf32> to vector<8x32xf32>
    %33 = vector.extract_strided_slice %30 {offsets = [0, 64], sizes = [8, 32], strides = [1, 1]} : vector<16x96xf32> to vector<8x32xf32>
    %c0_18 = arith.constant 0 : index
    %c0_19 = arith.constant 0 : index
    %c0_20 = arith.constant 0 : index
    %34 = vector.load %arg2[%c0_18, %c0_19, %c0_20] : memref<2x8x8xf32, #tpu.memory_space<vmem>>, vector<1x8x8xf32>
    %35 = vector.shape_cast %34 : vector<1x8x8xf32> to vector<8x8xf32>
    %36 = vector.extract_strided_slice %31 {offsets = [0, 0], sizes = [8, 8], strides = [1, 1]} : vector<8x32xf32> to vector<8x8xf32>
    %37 = vector.extract_strided_slice %32 {offsets = [0, 0], sizes = [8, 8], strides = [1, 1]} : vector<8x32xf32> to vector<8x8xf32>
    %38 = tpu.transpose %37, [1, 0] : vector<8x8xf32> -> vector<8x8xf32>
    %cst_21 = arith.constant dense<0.000000e+00> : vector<8x8xf32>
    %39 = tpu.matmul %36, %38, %cst_21 {dimension_numbers = #tpu.dot_dimension_numbers<[1], [0], [0], [1], [0, 0, 1, 1], [], []>} : vector<8x8xf32>, vector<8x8xf32>, vector<8x8xf32> -> vector<8x8xf32>
    %40 = arith.addf %39, %35 : vector<8x8xf32>
    %41 = vector.extract_strided_slice %33 {offsets = [0, 0], sizes = [8, 8], strides = [1, 1]} : vector<8x32xf32> to vector<8x8xf32>
    %cst_22 = arith.constant dense<0xFF800000> : vector<8xf32>
    %42 = vector.multi_reduction <maximumf>, %40, %cst_22 [1] : vector<8x8xf32> to vector<8xf32>
    %43 = vector.shape_cast %42 : vector<8xf32> to vector<8x1xf32>
    %44 = vector.broadcast %43 : vector<8x1xf32> to vector<8x8xf32>
    %45 = arith.subf %40, %44 : vector<8x8xf32>
    %46 = math.exp %45 : vector<8x8xf32>
    %cst_23 = arith.constant dense<0.000000e+00> : vector<8xf32>
    %47 = vector.multi_reduction <add>, %46, %cst_23 [1] : vector<8x8xf32> to vector<8xf32>
    %48 = vector.shape_cast %47 : vector<8xf32> to vector<8x1xf32>
    %49 = tpu.reciprocal %48 : vector<8x1xf32> -> vector<8x1xf32>
    %50 = vector.broadcast %49 : vector<8x1xf32> to vector<8x8xf32>
    %51 = arith.mulf %46, %50 : vector<8x8xf32>
    %cst_24 = arith.constant dense<0.000000e+00> : vector<8x8xf32>
    %52 = tpu.matmul %51, %41, %cst_24 {dimension_numbers = #tpu.dot_dimension_numbers<[1], [0], [0], [1], [0, 0, 1, 1], [], []>} : vector<8x8xf32>, vector<8x8xf32>, vector<8x8xf32> -> vector<8x8xf32>
    %53 = vector.extract_strided_slice %31 {offsets = [0, 8], sizes = [8, 8], strides = [1, 1]} : vector<8x32xf32> to vector<8x8xf32>
    %54 = vector.extract_strided_slice %32 {offsets = [0, 8], sizes = [8, 8], strides = [1, 1]} : vector<8x32xf32> to vector<8x8xf32>
    %55 = tpu.transpose %54, [1, 0] : vector<8x8xf32> -> vector<8x8xf32>
    %cst_25 = arith.constant dense<0.000000e+00> : vector<8x8xf32>
    %56 = tpu.matmul %53, %55, %cst_25 {dimension_numbers = #tpu.dot_dimension_numbers<[1], [0], [0], [1], [0, 0, 1, 1], [], []>} : vector<8x8xf32>, vector<8x8xf32>, vector<8x8xf32> -> vector<8x8xf32>
    %57 = arith.addf %56, %35 : vector<8x8xf32>
    %58 = vector.extract_strided_slice %33 {offsets = [0, 8], sizes = [8, 8], strides = [1, 1]} : vector<8x32xf32> to vector<8x8xf32>
    %cst_26 = arith.constant dense<0xFF800000> : vector<8xf32>
    %59 = vector.multi_reduction <maximumf>, %57, %cst_26 [1] : vector<8x8xf32> to vector<8xf32>
    %60 = vector.shape_cast %59 : vector<8xf32> to vector<8x1xf32>
    %61 = vector.broadcast %60 : vector<8x1xf32> to vector<8x8xf32>
    %62 = arith.subf %57, %61 : vector<8x8xf32>
    %63 = math.exp %62 : vector<8x8xf32>
    %cst_27 = arith.constant dense<0.000000e+00> : vector<8xf32>
    %64 = vector.multi_reduction <add>, %63, %cst_27 [1] : vector<8x8xf32> to vector<8xf32>
    %65 = vector.shape_cast %64 : vector<8xf32> to vector<8x1xf32>
    %66 = tpu.reciprocal %65 : vector<8x1xf32> -> vector<8x1xf32>
    %67 = vector.broadcast %66 : vector<8x1xf32> to vector<8x8xf32>
    %68 = arith.mulf %63, %67 : vector<8x8xf32>
    %cst_28 = arith.constant dense<0.000000e+00> : vector<8x8xf32>
    %69 = tpu.matmul %68, %58, %cst_28 {dimension_numbers = #tpu.dot_dimension_numbers<[1], [0], [0], [1], [0, 0, 1, 1], [], []>} : vector<8x8xf32>, vector<8x8xf32>, vector<8x8xf32> -> vector<8x8xf32>
    %70 = vector.extract_strided_slice %31 {offsets = [0, 16], sizes = [8, 8], strides = [1, 1]} : vector<8x32xf32> to vector<8x8xf32>
    %71 = vector.extract_strided_slice %32 {offsets = [0, 16], sizes = [8, 8], strides = [1, 1]} : vector<8x32xf32> to vector<8x8xf32>
    %72 = tpu.transpose %71, [1, 0] : vector<8x8xf32> -> vector<8x8xf32>
    %cst_29 = arith.constant dense<0.000000e+00> : vector<8x8xf32>
    %73 = tpu.matmul %70, %72, %cst_29 {dimension_numbers = #tpu.dot_dimension_numbers<[1], [0], [0], [1], [0, 0, 1, 1], [], []>} : vector<8x8xf32>, vector<8x8xf32>, vector<8x8xf32> -> vector<8x8xf32>
    %74 = arith.addf %73, %35 : vector<8x8xf32>
    %75 = vector.extract_strided_slice %33 {offsets = [0, 16], sizes = [8, 8], strides = [1, 1]} : vector<8x32xf32> to vector<8x8xf32>
    %cst_30 = arith.constant dense<0xFF800000> : vector<8xf32>
    %76 = vector.multi_reduction <maximumf>, %74, %cst_30 [1] : vector<8x8xf32> to vector<8xf32>
    %77 = vector.shape_cast %76 : vector<8xf32> to vector<8x1xf32>
    %78 = vector.broadcast %77 : vector<8x1xf32> to vector<8x8xf32>
    %79 = arith.subf %74, %78 : vector<8x8xf32>
    %80 = math.exp %79 : vector<8x8xf32>
    %cst_31 = arith.constant dense<0.000000e+00> : vector<8xf32>
    %81 = vector.multi_reduction <add>, %80, %cst_31 [1] : vector<8x8xf32> to vector<8xf32>
    %82 = vector.shape_cast %81 : vector<8xf32> to vector<8x1xf32>
    %83 = tpu.reciprocal %82 : vector<8x1xf32> -> vector<8x1xf32>
    %84 = vector.broadcast %83 : vector<8x1xf32> to vector<8x8xf32>
    %85 = arith.mulf %80, %84 : vector<8x8xf32>
    %cst_32 = arith.constant dense<0.000000e+00> : vector<8x8xf32>
    %86 = tpu.matmul %85, %75, %cst_32 {dimension_numbers = #tpu.dot_dimension_numbers<[1], [0], [0], [1], [0, 0, 1, 1], [], []>} : vector<8x8xf32>, vector<8x8xf32>, vector<8x8xf32> -> vector<8x8xf32>
    %87 = vector.extract_strided_slice %31 {offsets = [0, 24], sizes = [8, 8], strides = [1, 1]} : vector<8x32xf32> to vector<8x8xf32>
    %88 = vector.extract_strided_slice %32 {offsets = [0, 24], sizes = [8, 8], strides = [1, 1]} : vector<8x32xf32> to vector<8x8xf32>
    %89 = tpu.transpose %88, [1, 0] : vector<8x8xf32> -> vector<8x8xf32>
    %cst_33 = arith.constant dense<0.000000e+00> : vector<8x8xf32>
    %90 = tpu.matmul %87, %89, %cst_33 {dimension_numbers = #tpu.dot_dimension_numbers<[1], [0], [0], [1], [0, 0, 1, 1], [], []>} : vector<8x8xf32>, vector<8x8xf32>, vector<8x8xf32> -> vector<8x8xf32>
    %91 = arith.addf %90, %35 : vector<8x8xf32>
    %92 = vector.extract_strided_slice %33 {offsets = [0, 24], sizes = [8, 8], strides = [1, 1]} : vector<8x32xf32> to vector<8x8xf32>
    %cst_34 = arith.constant dense<0xFF800000> : vector<8xf32>
    %93 = vector.multi_reduction <maximumf>, %91, %cst_34 [1] : vector<8x8xf32> to vector<8xf32>
    %94 = vector.shape_cast %93 : vector<8xf32> to vector<8x1xf32>
    %95 = vector.broadcast %94 : vector<8x1xf32> to vector<8x8xf32>
    %96 = arith.subf %91, %95 : vector<8x8xf32>
    %97 = math.exp %96 : vector<8x8xf32>
    %cst_35 = arith.constant dense<0.000000e+00> : vector<8xf32>
    %98 = vector.multi_reduction <add>, %97, %cst_35 [1] : vector<8x8xf32> to vector<8xf32>
    %99 = vector.shape_cast %98 : vector<8xf32> to vector<8x1xf32>
    %100 = tpu.reciprocal %99 : vector<8x1xf32> -> vector<8x1xf32>
    %101 = vector.broadcast %100 : vector<8x1xf32> to vector<8x8xf32>
    %102 = arith.mulf %97, %101 : vector<8x8xf32>
    %cst_36 = arith.constant dense<0.000000e+00> : vector<8x8xf32>
    %103 = tpu.matmul %102, %92, %cst_36 {dimension_numbers = #tpu.dot_dimension_numbers<[1], [0], [0], [1], [0, 0, 1, 1], [], []>} : vector<8x8xf32>, vector<8x8xf32>, vector<8x8xf32> -> vector<8x8xf32>
    %104 = tpu.concatenate %52, %69, %86, %103 in 1 : vector<8x8xf32>, vector<8x8xf32>, vector<8x8xf32>, vector<8x8xf32> -> vector<8x32xf32>
    %105 = vector.extract_strided_slice %30 {offsets = [8, 0], sizes = [8, 32], strides = [1, 1]} : vector<16x96xf32> to vector<8x32xf32>
    %106 = vector.extract_strided_slice %30 {offsets = [8, 32], sizes = [8, 32], strides = [1, 1]} : vector<16x96xf32> to vector<8x32xf32>
    %107 = vector.extract_strided_slice %30 {offsets = [8, 64], sizes = [8, 32], strides = [1, 1]} : vector<16x96xf32> to vector<8x32xf32>
    %c1_37 = arith.constant 1 : index
    %c0_38 = arith.constant 0 : index
    %c0_39 = arith.constant 0 : index
    %108 = vector.load %arg2[%c1_37, %c0_38, %c0_39] : memref<2x8x8xf32, #tpu.memory_space<vmem>>, vector<1x8x8xf32>
    %109 = vector.shape_cast %108 : vector<1x8x8xf32> to vector<8x8xf32>
    %110 = vector.extract_strided_slice %105 {offsets = [0, 0], sizes = [8, 8], strides = [1, 1]} : vector<8x32xf32> to vector<8x8xf32>
    %111 = vector.extract_strided_slice %106 {offsets = [0, 0], sizes = [8, 8], strides = [1, 1]} : vector<8x32xf32> to vector<8x8xf32>
    %112 = tpu.transpose %111, [1, 0] : vector<8x8xf32> -> vector<8x8xf32>
    %cst_40 = arith.constant dense<0.000000e+00> : vector<8x8xf32>
    %113 = tpu.matmul %110, %112, %cst_40 {dimension_numbers = #tpu.dot_dimension_numbers<[1], [0], [0], [1], [0, 0, 1, 1], [], []>} : vector<8x8xf32>, vector<8x8xf32>, vector<8x8xf32> -> vector<8x8xf32>
    %114 = arith.addf %113, %109 : vector<8x8xf32>
    %115 = vector.extract_strided_slice %107 {offsets = [0, 0], sizes = [8, 8], strides = [1, 1]} : vector<8x32xf32> to vector<8x8xf32>
    %cst_41 = arith.constant dense<0xFF800000> : vector<8xf32>
    %116 = vector.multi_reduction <maximumf>, %114, %cst_41 [1] : vector<8x8xf32> to vector<8xf32>
    %117 = vector.shape_cast %116 : vector<8xf32> to vector<8x1xf32>
    %118 = vector.broadcast %117 : vector<8x1xf32> to vector<8x8xf32>
    %119 = arith.subf %114, %118 : vector<8x8xf32>
    %120 = math.exp %119 : vector<8x8xf32>
    %cst_42 = arith.constant dense<0.000000e+00> : vector<8xf32>
    %121 = vector.multi_reduction <add>, %120, %cst_42 [1] : vector<8x8xf32> to vector<8xf32>
    %122 = vector.shape_cast %121 : vector<8xf32> to vector<8x1xf32>
    %123 = tpu.reciprocal %122 : vector<8x1xf32> -> vector<8x1xf32>
    %124 = vector.broadcast %123 : vector<8x1xf32> to vector<8x8xf32>
    %125 = arith.mulf %120, %124 : vector<8x8xf32>
    %cst_43 = arith.constant dense<0.000000e+00> : vector<8x8xf32>
    %126 = tpu.matmul %125, %115, %cst_43 {dimension_numbers = #tpu.dot_dimension_numbers<[1], [0], [0], [1], [0, 0, 1, 1], [], []>} : vector<8x8xf32>, vector<8x8xf32>, vector<8x8xf32> -> vector<8x8xf32>
    %127 = vector.extract_strided_slice %105 {offsets = [0, 8], sizes = [8, 8], strides = [1, 1]} : vector<8x32xf32> to vector<8x8xf32>
    %128 = vector.extract_strided_slice %106 {offsets = [0, 8], sizes = [8, 8], strides = [1, 1]} : vector<8x32xf32> to vector<8x8xf32>
    %129 = tpu.transpose %128, [1, 0] : vector<8x8xf32> -> vector<8x8xf32>
    %cst_44 = arith.constant dense<0.000000e+00> : vector<8x8xf32>
    %130 = tpu.matmul %127, %129, %cst_44 {dimension_numbers = #tpu.dot_dimension_numbers<[1], [0], [0], [1], [0, 0, 1, 1], [], []>} : vector<8x8xf32>, vector<8x8xf32>, vector<8x8xf32> -> vector<8x8xf32>
    %131 = arith.addf %130, %109 : vector<8x8xf32>
    %132 = vector.extract_strided_slice %107 {offsets = [0, 8], sizes = [8, 8], strides = [1, 1]} : vector<8x32xf32> to vector<8x8xf32>
    %cst_45 = arith.constant dense<0xFF800000> : vector<8xf32>
    %133 = vector.multi_reduction <maximumf>, %131, %cst_45 [1] : vector<8x8xf32> to vector<8xf32>
    %134 = vector.shape_cast %133 : vector<8xf32> to vector<8x1xf32>
    %135 = vector.broadcast %134 : vector<8x1xf32> to vector<8x8xf32>
    %136 = arith.subf %131, %135 : vector<8x8xf32>
    %137 = math.exp %136 : vector<8x8xf32>
    %cst_46 = arith.constant dense<0.000000e+00> : vector<8xf32>
    %138 = vector.multi_reduction <add>, %137, %cst_46 [1] : vector<8x8xf32> to vector<8xf32>
    %139 = vector.shape_cast %138 : vector<8xf32> to vector<8x1xf32>
    %140 = tpu.reciprocal %139 : vector<8x1xf32> -> vector<8x1xf32>
    %141 = vector.broadcast %140 : vector<8x1xf32> to vector<8x8xf32>
    %142 = arith.mulf %137, %141 : vector<8x8xf32>
    %cst_47 = arith.constant dense<0.000000e+00> : vector<8x8xf32>
    %143 = tpu.matmul %142, %132, %cst_47 {dimension_numbers = #tpu.dot_dimension_numbers<[1], [0], [0], [1], [0, 0, 1, 1], [], []>} : vector<8x8xf32>, vector<8x8xf32>, vector<8x8xf32> -> vector<8x8xf32>
    %144 = vector.extract_strided_slice %105 {offsets = [0, 16], sizes = [8, 8], strides = [1, 1]} : vector<8x32xf32> to vector<8x8xf32>
    %145 = vector.extract_strided_slice %106 {offsets = [0, 16], sizes = [8, 8], strides = [1, 1]} : vector<8x32xf32> to vector<8x8xf32>
    %146 = tpu.transpose %145, [1, 0] : vector<8x8xf32> -> vector<8x8xf32>
    %cst_48 = arith.constant dense<0.000000e+00> : vector<8x8xf32>
    %147 = tpu.matmul %144, %146, %cst_48 {dimension_numbers = #tpu.dot_dimension_numbers<[1], [0], [0], [1], [0, 0, 1, 1], [], []>} : vector<8x8xf32>, vector<8x8xf32>, vector<8x8xf32> -> vector<8x8xf32>
    %148 = arith.addf %147, %109 : vector<8x8xf32>
    %149 = vector.extract_strided_slice %107 {offsets = [0, 16], sizes = [8, 8], strides = [1, 1]} : vector<8x32xf32> to vector<8x8xf32>
    %cst_49 = arith.constant dense<0xFF800000> : vector<8xf32>
    %150 = vector.multi_reduction <maximumf>, %148, %cst_49 [1] : vector<8x8xf32> to vector<8xf32>
    %151 = vector.shape_cast %150 : vector<8xf32> to vector<8x1xf32>
    %152 = vector.broadcast %151 : vector<8x1xf32> to vector<8x8xf32>
    %153 = arith.subf %148, %152 : vector<8x8xf32>
    %154 = math.exp %153 : vector<8x8xf32>
    %cst_50 = arith.constant dense<0.000000e+00> : vector<8xf32>
    %155 = vector.multi_reduction <add>, %154, %cst_50 [1] : vector<8x8xf32> to vector<8xf32>
    %156 = vector.shape_cast %155 : vector<8xf32> to vector<8x1xf32>
    %157 = tpu.reciprocal %156 : vector<8x1xf32> -> vector<8x1xf32>
    %158 = vector.broadcast %157 : vector<8x1xf32> to vector<8x8xf32>
    %159 = arith.mulf %154, %158 : vector<8x8xf32>
    %cst_51 = arith.constant dense<0.000000e+00> : vector<8x8xf32>
    %160 = tpu.matmul %159, %149, %cst_51 {dimension_numbers = #tpu.dot_dimension_numbers<[1], [0], [0], [1], [0, 0, 1, 1], [], []>} : vector<8x8xf32>, vector<8x8xf32>, vector<8x8xf32> -> vector<8x8xf32>
    %161 = vector.extract_strided_slice %105 {offsets = [0, 24], sizes = [8, 8], strides = [1, 1]} : vector<8x32xf32> to vector<8x8xf32>
    %162 = vector.extract_strided_slice %106 {offsets = [0, 24], sizes = [8, 8], strides = [1, 1]} : vector<8x32xf32> to vector<8x8xf32>
    %163 = tpu.transpose %162, [1, 0] : vector<8x8xf32> -> vector<8x8xf32>
    %cst_52 = arith.constant dense<0.000000e+00> : vector<8x8xf32>
    %164 = tpu.matmul %161, %163, %cst_52 {dimension_numbers = #tpu.dot_dimension_numbers<[1], [0], [0], [1], [0, 0, 1, 1], [], []>} : vector<8x8xf32>, vector<8x8xf32>, vector<8x8xf32> -> vector<8x8xf32>
    %165 = arith.addf %164, %109 : vector<8x8xf32>
    %166 = vector.extract_strided_slice %107 {offsets = [0, 24], sizes = [8, 8], strides = [1, 1]} : vector<8x32xf32> to vector<8x8xf32>
    %cst_53 = arith.constant dense<0xFF800000> : vector<8xf32>
    %167 = vector.multi_reduction <maximumf>, %165, %cst_53 [1] : vector<8x8xf32> to vector<8xf32>
    %168 = vector.shape_cast %167 : vector<8xf32> to vector<8x1xf32>
    %169 = vector.broadcast %168 : vector<8x1xf32> to vector<8x8xf32>
    %170 = arith.subf %165, %169 : vector<8x8xf32>
    %171 = math.exp %170 : vector<8x8xf32>
    %cst_54 = arith.constant dense<0.000000e+00> : vector<8xf32>
    %172 = vector.multi_reduction <add>, %171, %cst_54 [1] : vector<8x8xf32> to vector<8xf32>
    %173 = vector.shape_cast %172 : vector<8xf32> to vector<8x1xf32>
    %174 = tpu.reciprocal %173 : vector<8x1xf32> -> vector<8x1xf32>
    %175 = vector.broadcast %174 : vector<8x1xf32> to vector<8x8xf32>
    %176 = arith.mulf %171, %175 : vector<8x8xf32>
    %cst_55 = arith.constant dense<0.000000e+00> : vector<8x8xf32>
    %177 = tpu.matmul %176, %166, %cst_55 {dimension_numbers = #tpu.dot_dimension_numbers<[1], [0], [0], [1], [0, 0, 1, 1], [], []>} : vector<8x8xf32>, vector<8x8xf32>, vector<8x8xf32> -> vector<8x8xf32>
    %178 = tpu.concatenate %126, %143, %160, %177 in 1 : vector<8x8xf32>, vector<8x8xf32>, vector<8x8xf32>, vector<8x8xf32> -> vector<8x32xf32>
    %179 = tpu.concatenate %104, %178 in 0 : vector<8x32xf32>, vector<8x32xf32> -> vector<16x32xf32>
    %c0_56 = arith.constant 0 : index
    %c0_57 = arith.constant 0 : index
    %180 = vector.load %arg4[%c0_56, %c0_57] : memref<32x32xf32, #tpu.memory_space<vmem>>, vector<32x32xf32>
    %cst_58 = arith.constant dense<0.000000e+00> : vector<16x32xf32>
    %181 = tpu.matmul %179, %180, %cst_58 {dimension_numbers = #tpu.dot_dimension_numbers<[1], [0], [0], [1], [0, 0, 1, 1], [], []>} : vector<16x32xf32>, vector<32x32xf32>, vector<16x32xf32> -> vector<16x32xf32>
    %182 = arith.addf %7, %181 : vector<16x32xf32>
    %183 = vector.broadcast %1 : vector<1x32xf32> to vector<16x32xf32>
    %184 = arith.addf %182, %183 : vector<16x32xf32>
    %cst_59 = arith.constant dense<0.000000e+00> : vector<16xf32>
    %185 = vector.multi_reduction <add>, %184, %cst_59 [1] : vector<16x32xf32> to vector<16xf32>
    %186 = vector.shape_cast %185 : vector<16xf32> to vector<16x1xf32>
    %cst_60 = arith.constant 3.200000e+01 : f32
    %187 = vector.broadcast %cst_60 : f32 to vector<16x1xf32>
    %188 = arith.divf %186, %187 : vector<16x1xf32>
    %189 = vector.broadcast %188 : vector<16x1xf32> to vector<16x32xf32>
    %190 = arith.subf %184, %189 : vector<16x32xf32>
    %191 = arith.mulf %190, %190 : vector<16x32xf32>
    %cst_61 = arith.constant dense<0.000000e+00> : vector<16xf32>
    %192 = vector.multi_reduction <add>, %191, %cst_61 [1] : vector<16x32xf32> to vector<16xf32>
    %193 = vector.shape_cast %192 : vector<16xf32> to vector<16x1xf32>
    %cst_62 = arith.constant 3.100000e+01 : f32
    %194 = vector.broadcast %cst_62 : f32 to vector<16x1xf32>
    %195 = arith.divf %193, %194 : vector<16x1xf32>
    %196 = vector.broadcast %188 : vector<16x1xf32> to vector<16x32xf32>
    %197 = arith.subf %184, %196 : vector<16x32xf32>
    %198 = math.sqrt %195 : vector<16x1xf32>
    %cst_63 = arith.constant 9.99999997E-7 : f32
    %199 = vector.broadcast %cst_63 : f32 to vector<16x1xf32>
    %200 = arith.addf %198, %199 : vector<16x1xf32>
    %201 = vector.broadcast %200 : vector<16x1xf32> to vector<16x32xf32>
    %202 = arith.divf %197, %201 : vector<16x32xf32>
    %c0_64 = arith.constant 0 : index
    %c0_65 = arith.constant 0 : index
    %203 = vector.load %arg5[%c0_64, %c0_65] : memref<32x32xf32, #tpu.memory_space<vmem>>, vector<32x32xf32>
    %cst_66 = arith.constant dense<0.000000e+00> : vector<16x32xf32>
    %204 = tpu.matmul %202, %203, %cst_66 {dimension_numbers = #tpu.dot_dimension_numbers<[1], [0], [0], [1], [0, 0, 1, 1], [], []>} : vector<16x32xf32>, vector<32x32xf32>, vector<16x32xf32> -> vector<16x32xf32>
    %205 = vector.broadcast %2 : vector<1x32xf32> to vector<16x32xf32>
    %206 = arith.addf %204, %205 : vector<16x32xf32>
    %c0_67 = arith.constant 0 : index
    %c0_68 = arith.constant 0 : index
    %207 = vector.load %arg6[%c0_67, %c0_68] : memref<32x64xf32, #tpu.memory_space<vmem>>, vector<32x64xf32>
    %cst_69 = arith.constant dense<0.000000e+00> : vector<24x64xf32>
    %208 = tpu.matmul %8, %207, %cst_69 {dimension_numbers = #tpu.dot_dimension_numbers<[1], [0], [0], [1], [0, 0, 1, 1], [], []>} : vector<24x32xf32>, vector<32x64xf32>, vector<24x64xf32> -> vector<24x64xf32>
    %209 = vector.broadcast %3 : vector<1x64xf32> to vector<24x64xf32>
    %210 = arith.addf %208, %209 : vector<24x64xf32>
    %211 = vector.extract_strided_slice %206 {offsets = [0, 0], sizes = [8, 32], strides = [1, 1]} : vector<16x32xf32> to vector<8x32xf32>
    %212 = vector.extract_strided_slice %210 {offsets = [0, 0], sizes = [12, 32], strides = [1, 1]} : vector<24x64xf32> to vector<12x32xf32>
    %213 = vector.extract_strided_slice %210 {offsets = [0, 32], sizes = [12, 32], strides = [1, 1]} : vector<24x64xf32> to vector<12x32xf32>
    %214 = vector.extract_strided_slice %211 {offsets = [0, 0], sizes = [8, 8], strides = [1, 1]} : vector<8x32xf32> to vector<8x8xf32>
    %215 = vector.extract_strided_slice %212 {offsets = [0, 0], sizes = [12, 8], strides = [1, 1]} : vector<12x32xf32> to vector<12x8xf32>
    %216 = tpu.transpose %215, [1, 0] : vector<12x8xf32> -> vector<8x12xf32>
    %cst_70 = arith.constant dense<0.000000e+00> : vector<8x12xf32>
    %217 = tpu.matmul %214, %216, %cst_70 {dimension_numbers = #tpu.dot_dimension_numbers<[1], [0], [0], [1], [0, 0, 1, 1], [], []>} : vector<8x8xf32>, vector<8x12xf32>, vector<8x12xf32> -> vector<8x12xf32>
    %218 = vector.extract_strided_slice %213 {offsets = [0, 0], sizes = [12, 8], strides = [1, 1]} : vector<12x32xf32> to vector<12x8xf32>
    %cst_71 = arith.constant dense<0xFF800000> : vector<8xf32>
    %219 = vector.multi_reduction <maximumf>, %217, %cst_71 [1] : vector<8x12xf32> to vector<8xf32>
    %220 = vector.shape_cast %219 : vector<8xf32> to vector<8x1xf32>
    %221 = vector.broadcast %220 : vector<8x1xf32> to vector<8x12xf32>
    %222 = arith.subf %217, %221 : vector<8x12xf32>
    %223 = math.exp %222 : vector<8x12xf32>
    %cst_72 = arith.constant dense<0.000000e+00> : vector<8xf32>
    %224 = vector.multi_reduction <add>, %223, %cst_72 [1] : vector<8x12xf32> to vector<8xf32>
    %225 = vector.shape_cast %224 : vector<8xf32> to vector<8x1xf32>
    %226 = tpu.reciprocal %225 : vector<8x1xf32> -> vector<8x1xf32>
    %227 = vector.broadcast %226 : vector<8x1xf32> to vector<8x12xf32>
    %228 = arith.mulf %223, %227 : vector<8x12xf32>
    %cst_73 = arith.constant dense<0.000000e+00> : vector<8x8xf32>
    %229 = tpu.matmul %228, %218, %cst_73 {dimension_numbers = #tpu.dot_dimension_numbers<[1], [0], [0], [1], [0, 0, 1, 1], [], []>} : vector<8x12xf32>, vector<12x8xf32>, vector<8x8xf32> -> vector<8x8xf32>
    %230 = vector.extract_strided_slice %211 {offsets = [0, 8], sizes = [8, 8], strides = [1, 1]} : vector<8x32xf32> to vector<8x8xf32>
    %231 = vector.extract_strided_slice %212 {offsets = [0, 8], sizes = [12, 8], strides = [1, 1]} : vector<12x32xf32> to vector<12x8xf32>
    %232 = tpu.transpose %231, [1, 0] : vector<12x8xf32> -> vector<8x12xf32>
    %cst_74 = arith.constant dense<0.000000e+00> : vector<8x12xf32>
    %233 = tpu.matmul %230, %232, %cst_74 {dimension_numbers = #tpu.dot_dimension_numbers<[1], [0], [0], [1], [0, 0, 1, 1], [], []>} : vector<8x8xf32>, vector<8x12xf32>, vector<8x12xf32> -> vector<8x12xf32>
    %234 = vector.extract_strided_slice %213 {offsets = [0, 8], sizes = [12, 8], strides = [1, 1]} : vector<12x32xf32> to vector<12x8xf32>
    %cst_75 = arith.constant dense<0xFF800000> : vector<8xf32>
    %235 = vector.multi_reduction <maximumf>, %233, %cst_75 [1] : vector<8x12xf32> to vector<8xf32>
    %236 = vector.shape_cast %235 : vector<8xf32> to vector<8x1xf32>
    %237 = vector.broadcast %236 : vector<8x1xf32> to vector<8x12xf32>
    %238 = arith.subf %233, %237 : vector<8x12xf32>
    %239 = math.exp %238 : vector<8x12xf32>
    %cst_76 = arith.constant dense<0.000000e+00> : vector<8xf32>
    %240 = vector.multi_reduction <add>, %239, %cst_76 [1] : vector<8x12xf32> to vector<8xf32>
    %241 = vector.shape_cast %240 : vector<8xf32> to vector<8x1xf32>
    %242 = tpu.reciprocal %241 : vector<8x1xf32> -> vector<8x1xf32>
    %243 = vector.broadcast %242 : vector<8x1xf32> to vector<8x12xf32>
    %244 = arith.mulf %239, %243 : vector<8x12xf32>
    %cst_77 = arith.constant dense<0.000000e+00> : vector<8x8xf32>
    %245 = tpu.matmul %244, %234, %cst_77 {dimension_numbers = #tpu.dot_dimension_numbers<[1], [0], [0], [1], [0, 0, 1, 1], [], []>} : vector<8x12xf32>, vector<12x8xf32>, vector<8x8xf32> -> vector<8x8xf32>
    %246 = vector.extract_strided_slice %211 {offsets = [0, 16], sizes = [8, 8], strides = [1, 1]} : vector<8x32xf32> to vector<8x8xf32>
    %247 = vector.extract_strided_slice %212 {offsets = [0, 16], sizes = [12, 8], strides = [1, 1]} : vector<12x32xf32> to vector<12x8xf32>
    %248 = tpu.transpose %247, [1, 0] : vector<12x8xf32> -> vector<8x12xf32>
    %cst_78 = arith.constant dense<0.000000e+00> : vector<8x12xf32>
    %249 = tpu.matmul %246, %248, %cst_78 {dimension_numbers = #tpu.dot_dimension_numbers<[1], [0], [0], [1], [0, 0, 1, 1], [], []>} : vector<8x8xf32>, vector<8x12xf32>, vector<8x12xf32> -> vector<8x12xf32>
    %250 = vector.extract_strided_slice %213 {offsets = [0, 16], sizes = [12, 8], strides = [1, 1]} : vector<12x32xf32> to vector<12x8xf32>
    %cst_79 = arith.constant dense<0xFF800000> : vector<8xf32>
    %251 = vector.multi_reduction <maximumf>, %249, %cst_79 [1] : vector<8x12xf32> to vector<8xf32>
    %252 = vector.shape_cast %251 : vector<8xf32> to vector<8x1xf32>
    %253 = vector.broadcast %252 : vector<8x1xf32> to vector<8x12xf32>
    %254 = arith.subf %249, %253 : vector<8x12xf32>
    %255 = math.exp %254 : vector<8x12xf32>
    %cst_80 = arith.constant dense<0.000000e+00> : vector<8xf32>
    %256 = vector.multi_reduction <add>, %255, %cst_80 [1] : vector<8x12xf32> to vector<8xf32>
    %257 = vector.shape_cast %256 : vector<8xf32> to vector<8x1xf32>
    %258 = tpu.reciprocal %257 : vector<8x1xf32> -> vector<8x1xf32>
    %259 = vector.broadcast %258 : vector<8x1xf32> to vector<8x12xf32>
    %260 = arith.mulf %255, %259 : vector<8x12xf32>
    %cst_81 = arith.constant dense<0.000000e+00> : vector<8x8xf32>
    %261 = tpu.matmul %260, %250, %cst_81 {dimension_numbers = #tpu.dot_dimension_numbers<[1], [0], [0], [1], [0, 0, 1, 1], [], []>} : vector<8x12xf32>, vector<12x8xf32>, vector<8x8xf32> -> vector<8x8xf32>
    %262 = vector.extract_strided_slice %211 {offsets = [0, 24], sizes = [8, 8], strides = [1, 1]} : vector<8x32xf32> to vector<8x8xf32>
    %263 = vector.extract_strided_slice %212 {offsets = [0, 24], sizes = [12, 8], strides = [1, 1]} : vector<12x32xf32> to vector<12x8xf32>
    %264 = tpu.transpose %263, [1, 0] : vector<12x8xf32> -> vector<8x12xf32>
    %cst_82 = arith.constant dense<0.000000e+00> : vector<8x12xf32>
    %265 = tpu.matmul %262, %264, %cst_82 {dimension_numbers = #tpu.dot_dimension_numbers<[1], [0], [0], [1], [0, 0, 1, 1], [], []>} : vector<8x8xf32>, vector<8x12xf32>, vector<8x12xf32> -> vector<8x12xf32>
    %266 = vector.extract_strided_slice %213 {offsets = [0, 24], sizes = [12, 8], strides = [1, 1]} : vector<12x32xf32> to vector<12x8xf32>
    %cst_83 = arith.constant dense<0xFF800000> : vector<8xf32>
    %267 = vector.multi_reduction <maximumf>, %265, %cst_83 [1] : vector<8x12xf32> to vector<8xf32>
    %268 = vector.shape_cast %267 : vector<8xf32> to vector<8x1xf32>
    %269 = vector.broadcast %268 : vector<8x1xf32> to vector<8x12xf32>
    %270 = arith.subf %265, %269 : vector<8x12xf32>
    %271 = math.exp %270 : vector<8x12xf32>
    %cst_84 = arith.constant dense<0.000000e+00> : vector<8xf32>
    %272 = vector.multi_reduction <add>, %271, %cst_84 [1] : vector<8x12xf32> to vector<8xf32>
    %273 = vector.shape_cast %272 : vector<8xf32> to vector<8x1xf32>
    %274 = tpu.reciprocal %273 : vector<8x1xf32> -> vector<8x1xf32>
    %275 = vector.broadcast %274 : vector<8x1xf32> to vector<8x12xf32>
    %276 = arith.mulf %271, %275 : vector<8x12xf32>
    %cst_85 = arith.constant dense<0.000000e+00> : vector<8x8xf32>
    %277 = tpu.matmul %276, %266, %cst_85 {dimension_numbers = #tpu.dot_dimension_numbers<[1], [0], [0], [1], [0, 0, 1, 1], [], []>} : vector<8x12xf32>, vector<12x8xf32>, vector<8x8xf32> -> vector<8x8xf32>
    %278 = tpu.concatenate %229, %245, %261, %277 in 1 : vector<8x8xf32>, vector<8x8xf32>, vector<8x8xf32>, vector<8x8xf32> -> vector<8x32xf32>
    %279 = vector.extract_strided_slice %206 {offsets = [8, 0], sizes = [8, 32], strides = [1, 1]} : vector<16x32xf32> to vector<8x32xf32>
    %280 = vector.extract_strided_slice %210 {offsets = [12, 0], sizes = [12, 32], strides = [1, 1]} : vector<24x64xf32> to vector<12x32xf32>
    %281 = vector.extract_strided_slice %210 {offsets = [12, 32], sizes = [12, 32], strides = [1, 1]} : vector<24x64xf32> to vector<12x32xf32>
    %282 = vector.extract_strided_slice %279 {offsets = [0, 0], sizes = [8, 8], strides = [1, 1]} : vector<8x32xf32> to vector<8x8xf32>
    %283 = vector.extract_strided_slice %280 {offsets = [0, 0], sizes = [12, 8], strides = [1, 1]} : vector<12x32xf32> to vector<12x8xf32>
    %284 = tpu.transpose %283, [1, 0] : vector<12x8xf32> -> vector<8x12xf32>
    %cst_86 = arith.constant dense<0.000000e+00> : vector<8x12xf32>
    %285 = tpu.matmul %282, %284, %cst_86 {dimension_numbers = #tpu.dot_dimension_numbers<[1], [0], [0], [1], [0, 0, 1, 1], [], []>} : vector<8x8xf32>, vector<8x12xf32>, vector<8x12xf32> -> vector<8x12xf32>
    %286 = vector.extract_strided_slice %281 {offsets = [0, 0], sizes = [12, 8], strides = [1, 1]} : vector<12x32xf32> to vector<12x8xf32>
    %cst_87 = arith.constant dense<0xFF800000> : vector<8xf32>
    %287 = vector.multi_reduction <maximumf>, %285, %cst_87 [1] : vector<8x12xf32> to vector<8xf32>
    %288 = vector.shape_cast %287 : vector<8xf32> to vector<8x1xf32>
    %289 = vector.broadcast %288 : vector<8x1xf32> to vector<8x12xf32>
    %290 = arith.subf %285, %289 : vector<8x12xf32>
    %291 = math.exp %290 : vector<8x12xf32>
    %cst_88 = arith.constant dense<0.000000e+00> : vector<8xf32>
    %292 = vector.multi_reduction <add>, %291, %cst_88 [1] : vector<8x12xf32> to vector<8xf32>
    %293 = vector.shape_cast %292 : vector<8xf32> to vector<8x1xf32>
    %294 = tpu.reciprocal %293 : vector<8x1xf32> -> vector<8x1xf32>
    %295 = vector.broadcast %294 : vector<8x1xf32> to vector<8x12xf32>
    %296 = arith.mulf %291, %295 : vector<8x12xf32>
    %cst_89 = arith.constant dense<0.000000e+00> : vector<8x8xf32>
    %297 = tpu.matmul %296, %286, %cst_89 {dimension_numbers = #tpu.dot_dimension_numbers<[1], [0], [0], [1], [0, 0, 1, 1], [], []>} : vector<8x12xf32>, vector<12x8xf32>, vector<8x8xf32> -> vector<8x8xf32>
    %298 = vector.extract_strided_slice %279 {offsets = [0, 8], sizes = [8, 8], strides = [1, 1]} : vector<8x32xf32> to vector<8x8xf32>
    %299 = vector.extract_strided_slice %280 {offsets = [0, 8], sizes = [12, 8], strides = [1, 1]} : vector<12x32xf32> to vector<12x8xf32>
    %300 = tpu.transpose %299, [1, 0] : vector<12x8xf32> -> vector<8x12xf32>
    %cst_90 = arith.constant dense<0.000000e+00> : vector<8x12xf32>
    %301 = tpu.matmul %298, %300, %cst_90 {dimension_numbers = #tpu.dot_dimension_numbers<[1], [0], [0], [1], [0, 0, 1, 1], [], []>} : vector<8x8xf32>, vector<8x12xf32>, vector<8x12xf32> -> vector<8x12xf32>
    %302 = vector.extract_strided_slice %281 {offsets = [0, 8], sizes = [12, 8], strides = [1, 1]} : vector<12x32xf32> to vector<12x8xf32>
    %cst_91 = arith.constant dense<0xFF800000> : vector<8xf32>
    %303 = vector.multi_reduction <maximumf>, %301, %cst_91 [1] : vector<8x12xf32> to vector<8xf32>
    %304 = vector.shape_cast %303 : vector<8xf32> to vector<8x1xf32>
    %305 = vector.broadcast %304 : vector<8x1xf32> to vector<8x12xf32>
    %306 = arith.subf %301, %305 : vector<8x12xf32>
    %307 = math.exp %306 : vector<8x12xf32>
    %cst_92 = arith.constant dense<0.000000e+00> : vector<8xf32>
    %308 = vector.multi_reduction <add>, %307, %cst_92 [1] : vector<8x12xf32> to vector<8xf32>
    %309 = vector.shape_cast %308 : vector<8xf32> to vector<8x1xf32>
    %310 = tpu.reciprocal %309 : vector<8x1xf32> -> vector<8x1xf32>
    %311 = vector.broadcast %310 : vector<8x1xf32> to vector<8x12xf32>
    %312 = arith.mulf %307, %311 : vector<8x12xf32>
    %cst_93 = arith.constant dense<0.000000e+00> : vector<8x8xf32>
    %313 = tpu.matmul %312, %302, %cst_93 {dimension_numbers = #tpu.dot_dimension_numbers<[1], [0], [0], [1], [0, 0, 1, 1], [], []>} : vector<8x12xf32>, vector<12x8xf32>, vector<8x8xf32> -> vector<8x8xf32>
    %314 = vector.extract_strided_slice %279 {offsets = [0, 16], sizes = [8, 8], strides = [1, 1]} : vector<8x32xf32> to vector<8x8xf32>
    %315 = vector.extract_strided_slice %280 {offsets = [0, 16], sizes = [12, 8], strides = [1, 1]} : vector<12x32xf32> to vector<12x8xf32>
    %316 = tpu.transpose %315, [1, 0] : vector<12x8xf32> -> vector<8x12xf32>
    %cst_94 = arith.constant dense<0.000000e+00> : vector<8x12xf32>
    %317 = tpu.matmul %314, %316, %cst_94 {dimension_numbers = #tpu.dot_dimension_numbers<[1], [0], [0], [1], [0, 0, 1, 1], [], []>} : vector<8x8xf32>, vector<8x12xf32>, vector<8x12xf32> -> vector<8x12xf32>
    %318 = vector.extract_strided_slice %281 {offsets = [0, 16], sizes = [12, 8], strides = [1, 1]} : vector<12x32xf32> to vector<12x8xf32>
    %cst_95 = arith.constant dense<0xFF800000> : vector<8xf32>
    %319 = vector.multi_reduction <maximumf>, %317, %cst_95 [1] : vector<8x12xf32> to vector<8xf32>
    %320 = vector.shape_cast %319 : vector<8xf32> to vector<8x1xf32>
    %321 = vector.broadcast %320 : vector<8x1xf32> to vector<8x12xf32>
    %322 = arith.subf %317, %321 : vector<8x12xf32>
    %323 = math.exp %322 : vector<8x12xf32>
    %cst_96 = arith.constant dense<0.000000e+00> : vector<8xf32>
    %324 = vector.multi_reduction <add>, %323, %cst_96 [1] : vector<8x12xf32> to vector<8xf32>
    %325 = vector.shape_cast %324 : vector<8xf32> to vector<8x1xf32>
    %326 = tpu.reciprocal %325 : vector<8x1xf32> -> vector<8x1xf32>
    %327 = vector.broadcast %326 : vector<8x1xf32> to vector<8x12xf32>
    %328 = arith.mulf %323, %327 : vector<8x12xf32>
    %cst_97 = arith.constant dense<0.000000e+00> : vector<8x8xf32>
    %329 = tpu.matmul %328, %318, %cst_97 {dimension_numbers = #tpu.dot_dimension_numbers<[1], [0], [0], [1], [0, 0, 1, 1], [], []>} : vector<8x12xf32>, vector<12x8xf32>, vector<8x8xf32> -> vector<8x8xf32>
    %330 = vector.extract_strided_slice %279 {offsets = [0, 24], sizes = [8, 8], strides = [1, 1]} : vector<8x32xf32> to vector<8x8xf32>
    %331 = vector.extract_strided_slice %280 {offsets = [0, 24], sizes = [12, 8], strides = [1, 1]} : vector<12x32xf32> to vector<12x8xf32>
    %332 = tpu.transpose %331, [1, 0] : vector<12x8xf32> -> vector<8x12xf32>
    %cst_98 = arith.constant dense<0.000000e+00> : vector<8x12xf32>
    %333 = tpu.matmul %330, %332, %cst_98 {dimension_numbers = #tpu.dot_dimension_numbers<[1], [0], [0], [1], [0, 0, 1, 1], [], []>} : vector<8x8xf32>, vector<8x12xf32>, vector<8x12xf32> -> vector<8x12xf32>
    %334 = vector.extract_strided_slice %281 {offsets = [0, 24], sizes = [12, 8], strides = [1, 1]} : vector<12x32xf32> to vector<12x8xf32>
    %cst_99 = arith.constant dense<0xFF800000> : vector<8xf32>
    %335 = vector.multi_reduction <maximumf>, %333, %cst_99 [1] : vector<8x12xf32> to vector<8xf32>
    %336 = vector.shape_cast %335 : vector<8xf32> to vector<8x1xf32>
    %337 = vector.broadcast %336 : vector<8x1xf32> to vector<8x12xf32>
    %338 = arith.subf %333, %337 : vector<8x12xf32>
    %339 = math.exp %338 : vector<8x12xf32>
    %cst_100 = arith.constant dense<0.000000e+00> : vector<8xf32>
    %340 = vector.multi_reduction <add>, %339, %cst_100 [1] : vector<8x12xf32> to vector<8xf32>
    %341 = vector.shape_cast %340 : vector<8xf32> to vector<8x1xf32>
    %342 = tpu.reciprocal %341 : vector<8x1xf32> -> vector<8x1xf32>
    %343 = vector.broadcast %342 : vector<8x1xf32> to vector<8x12xf32>
    %344 = arith.mulf %339, %343 : vector<8x12xf32>
    %cst_101 = arith.constant dense<0.000000e+00> : vector<8x8xf32>
    %345 = tpu.matmul %344, %334, %cst_101 {dimension_numbers = #tpu.dot_dimension_numbers<[1], [0], [0], [1], [0, 0, 1, 1], [], []>} : vector<8x12xf32>, vector<12x8xf32>, vector<8x8xf32> -> vector<8x8xf32>
    %346 = tpu.concatenate %297, %313, %329, %345 in 1 : vector<8x8xf32>, vector<8x8xf32>, vector<8x8xf32>, vector<8x8xf32> -> vector<8x32xf32>
    %347 = tpu.concatenate %278, %346 in 0 : vector<8x32xf32>, vector<8x32xf32> -> vector<16x32xf32>
    %c0_102 = arith.constant 0 : index
    %c0_103 = arith.constant 0 : index
    %348 = vector.load %arg7[%c0_102, %c0_103] : memref<32x32xf32, #tpu.memory_space<vmem>>, vector<32x32xf32>
    %cst_104 = arith.constant dense<0.000000e+00> : vector<16x32xf32>
    %349 = tpu.matmul %347, %348, %cst_104 {dimension_numbers = #tpu.dot_dimension_numbers<[1], [0], [0], [1], [0, 0, 1, 1], [], []>} : vector<16x32xf32>, vector<32x32xf32>, vector<16x32xf32> -> vector<16x32xf32>
    %350 = arith.addf %184, %349 : vector<16x32xf32>
    %351 = vector.broadcast %4 : vector<1x32xf32> to vector<16x32xf32>
    %352 = arith.addf %350, %351 : vector<16x32xf32>
    %cst_105 = arith.constant dense<0.000000e+00> : vector<16xf32>
    %353 = vector.multi_reduction <add>, %352, %cst_105 [1] : vector<16x32xf32> to vector<16xf32>
    %354 = vector.shape_cast %353 : vector<16xf32> to vector<16x1xf32>
    %cst_106 = arith.constant 3.200000e+01 : f32
    %355 = vector.broadcast %cst_106 : f32 to vector<16x1xf32>
    %356 = arith.divf %354, %355 : vector<16x1xf32>
    %357 = vector.broadcast %356 : vector<16x1xf32> to vector<16x32xf32>
    %358 = arith.subf %352, %357 : vector<16x32xf32>
    %359 = arith.mulf %358, %358 : vector<16x32xf32>
    %cst_107 = arith.constant dense<0.000000e+00> : vector<16xf32>
    %360 = vector.multi_reduction <add>, %359, %cst_107 [1] : vector<16x32xf32> to vector<16xf32>
    %361 = vector.shape_cast %360 : vector<16xf32> to vector<16x1xf32>
    %cst_108 = arith.constant 3.100000e+01 : f32
    %362 = vector.broadcast %cst_108 : f32 to vector<16x1xf32>
    %363 = arith.divf %361, %362 : vector<16x1xf32>
    %364 = vector.broadcast %356 : vector<16x1xf32> to vector<16x32xf32>
    %365 = arith.subf %352, %364 : vector<16x32xf32>
    %366 = math.sqrt %363 : vector<16x1xf32>
    %cst_109 = arith.constant 9.99999997E-7 : f32
    %367 = vector.broadcast %cst_109 : f32 to vector<16x1xf32>
    %368 = arith.addf %366, %367 : vector<16x1xf32>
    %369 = vector.broadcast %368 : vector<16x1xf32> to vector<16x32xf32>
    %370 = arith.divf %365, %369 : vector<16x32xf32>
    %c0_110 = arith.constant 0 : index
    %c0_111 = arith.constant 0 : index
    %371 = vector.load %arg8[%c0_110, %c0_111] : memref<32x64xf32, #tpu.memory_space<vmem>>, vector<32x64xf32>
    %cst_112 = arith.constant dense<0.000000e+00> : vector<16x64xf32>
    %372 = tpu.matmul %370, %371, %cst_112 {dimension_numbers = #tpu.dot_dimension_numbers<[1], [0], [0], [1], [0, 0, 1, 1], [], []>} : vector<16x32xf32>, vector<32x64xf32>, vector<16x64xf32> -> vector<16x64xf32>
    %373 = vector.broadcast %5 : vector<1x64xf32> to vector<16x64xf32>
    %374 = arith.addf %372, %373 : vector<16x64xf32>
    %cst_113 = arith.constant 0.000000e+00 : f32
    %375 = vector.broadcast %cst_113 : f32 to vector<16x64xf32>
    %376 = arith.maximumf %374, %375 : vector<16x64xf32>
    %c0_114 = arith.constant 0 : index
    %c0_115 = arith.constant 0 : index
    %377 = vector.load %arg9[%c0_114, %c0_115] : memref<64x32xf32, #tpu.memory_space<vmem>>, vector<64x32xf32>
    %cst_116 = arith.constant dense<0.000000e+00> : vector<16x32xf32>
    %378 = tpu.matmul %376, %377, %cst_116 {dimension_numbers = #tpu.dot_dimension_numbers<[1], [0], [0], [1], [0, 0, 1, 1], [], []>} : vector<16x64xf32>, vector<64x32xf32>, vector<16x32xf32> -> vector<16x32xf32>
    %379 = arith.addf %352, %378 : vector<16x32xf32>
    %380 = vector.broadcast %6 : vector<1x32xf32> to vector<16x32xf32>
    %381 = arith.addf %379, %380 : vector<16x32xf32>
    %c0_117 = arith.constant 0 : index
    %c0_118 = arith.constant 0 : index
    %382 = vector.load %arg11[%c0_117, %c0_118] : memref<16x32xf32, #tpu.memory_space<vmem>>, vector<16x32xf32>
    tpu.vector_store %arg11[%c0_117, %c0_118], %381 {strides = array<i32>} : memref<16x32xf32, #tpu.memory_space<vmem>>, vector<16x32xf32>,
    return
  }
}

</mosaic_0001>

<bundles_post_ra>
// kernel: decoder_layer.1
= control target key start
LH: loop header
LB: loop body
LE: loop exit
PB: predicated region body
PF: predicated region fallthrough
CT: control target
= control target key end

     0   :  { %16 = vsyncpa [#allocation3], 0  ;;  %s2865_s0 = inlined_call_operand.vmem [shape: f32[16,32], index: 0, kind: input, shape index: {}]   ;;  %s2866_s1 = inlined_call_operand.vmem [shape: f32[24,32], index: 1, kind: input, shape index: {}]   ;;  %s2867_s2 = inlined_call_operand.vmem [shape: f32[2,8,8], index: 2, kind: input, shape index: {}]   ;;  %s2868_s3 = inlined_call_operand.vmem [shape: f32[32,96], index: 3, kind: input, shape index: {}]   ;;  %s2869_s4 = inlined_call_operand.vmem [shape: f32[32,32], index: 4, kind: input, shape index: {}]   ;;  %s2870_s5 = inlined_call_operand.vmem [shape: f32[32,32], index: 5, kind: input, shape index: {}]   ;;  %s2871_s6 = inlined_call_operand.vmem [shape: f32[32,64], index: 6, kind: input, shape index: {}]   ;;  %s2872_s7 = inlined_call_operand.vmem [shape: f32[32,32], index: 7, kind: input, shape index: {}]   ;;  %s2873_s8 = inlined_call_operand.hbm [shape: f32[32,64], index: 8, kind: input, shape index: {}]   ;;  %s2874_s9 = inlined_call_operand.vmem [shape: f32[64,32], index: 9, kind: input, shape index: {}]   ;;  %s2875_s10 = inlined_call_operand.vmem [shape: f32[7,96], index: 10, kind: input, shape index: {}]   ;;  %s2876_s11 = inlined_call_operand.hbm [shape: f32[16,32], index: 11, kind: output, shape index: {}]  }
   0x1   :  { %17 = vsyncpa [#allocation4], 0  ;;  %s38_s19 = sshll.u32 %s2873_s8, 4  ;;  %s2222_s20 = smov [#allocation2]   ;;  %s39_s19 = int_to_ptr.hbm [resolvable:$true] %s38_s19 }
   0x2   :  { %s40_s21 = sshll.u32 %s2222_s20, 4  ;;  %s2223_s22 = smov 128   ;;  %s41_s21 = int_to_ptr.vmem [resolvable:$true] %s40_s21 }
   0x3   :  { %s2224_s23 = smov 8  }
   0x4   :  { %46 = dma.hbm_to_vmem [thread:$0]  %s39_s19, 512, %s41_s21, [#allocation3], %s2223_s22, %s2223_s22, %s2224_s23  }
   0x5   :  { %2218 = dma.done.wait [#allocation3], 512  }
   0x6   :  { %2219 = vsyncadd [#allocation3], 4294966784  ;;  %vm67_vm0 = vcmask 261120   ;;  %v2310_v0 = vld [vmem:[%s2865_s0] sm:$0xff]  ;;  %v2225_v2 = vmov 32.0   ;;  %v2226_v14 = vmov 31.0  }
   0x7   :  { %v68_v1 = vsel %vm67_vm0, %v2310_v0, 0.0  ;;  %2078 = vrcp.f32 %v2225_v2  ;;  %v161_v18 = vld [vmem:[%s2868_s3 + $0x18] sm:$0xff]  ;;  %v160_v19 = vld [vmem:[%s2868_s3 + $0x10] sm:$0xff]  ;;  %v159_v21 = vld [vmem:[%s2868_s3 + $0x8] sm:$0xff]  ;;  %s2227_s15 = smov 120   ;;  %s2228_s16 = smov 96  }
   0x8   :  { %69 = vadd.xlane.f32.xlu0 %v68_v1  ;;  %2080 = vrcp.f32 %v2226_v14  ;;  %181 = vmatpush.msra.mxu0 %v161_v18  ;;  %v158_v22 = vld [vmem:[%s2868_s3] sm:$0xff]  ;;  %s2229_s17 = smov 88   ;;  %v2352_v52 = vld [vmem:[%s2865_s0 + $0x8] sm:$0xff]  ;;  %s2230_s20 = smov 56   ;;  %vm196_vm9 = vcmask 64512  }
   0x9   :  { %2048 = vmatpush.msra.mxu2 %v161_v18  ;;  %v2338_v49 = vld [vmem:[%s2875_s10] ss:$0 sm:$0xff]  ;;  %v71_v53 = vsel %vm67_vm0, %v2352_v52, 0.0  ;;  %s2231_s21 = smov 112   ;;  %s2232_s25 = smov 64  }
   0xa   :  { %182 = vmatpush.msra.mxu0 %v160_v19  ;;  %v2369_v59 = vld [vmem:[%s2867_s2] sm:$0xff]  ;;  %s2233_s8 = smov 72   ;;  %s2234_s26 = smov 80  }
   0xb   :  { %2049 = vmatpush.msra.mxu2 %v160_v19  ;;  %s2235_s27 = smov 104   ;;  %s2236_s28 = smov 40  }
   0xc   :  { %183 = vmatpush.msra.mxu0 %v159_v21  ;;  %s2237_s29 = smov 48   ;;  %s2238_s30 = smov 16  }
   0xd   :  { %v2079_v3 = vpop.eup %2078  ;;  %2050 = vmatpush.msra.mxu2 %v159_v21  ;;  %s2239_s3 = smov 24  }
   0xe   :  { %v75_v4 = vmul.f32 32.0, %v2079_v3  ;;  %vm79_vm1 = vweird.f32 %v2079_v3  ;;  %v2081_v15 = vpop.eup %2080  ;;  %184 = vmatpush.msra.mxu0 %v158_v22 }
   0xf   :  { %v94_v16 = vmul.f32 31.0, %v2081_v15  ;;  %vm98_vm2 = vweird.f32 %v2081_v15  ;;  %2051 = vmatpush.msra.mxu2 %v158_v22 }
  0x10   :  { %v76_v5 = vsub.f32 1.0, %v75_v4 }
  0x11   :  { %v95_v17 = vsub.f32 1.0, %v94_v16 }
  0x12   :  { %v77_v6 = vmul.f32 %v2079_v3, %v76_v5 }
  0x13   :  { %v96_v20 = vmul.f32 %v2081_v15, %v95_v17 }
  0x14   :  { %v78_v7 = vadd.f32 %v2079_v3, %v77_v6 }
  0x15   :  { %v97_v23 = vadd.f32 %v2081_v15, %v96_v20 }
  0x16   :  { %v2314_v8 = vsel %vm79_vm1, %v2079_v3, %v78_v7 }
  0x17   :  { %v2331_v24 = vsel %vm98_vm2, %v2081_v15, %v97_v23 }
  0x7b   :  { %v70_v9 = vpop.xlane.xlu0 %69 }
  0x7c   :  { %v81_v10 = vmul.f32 %v2314_v8, %v70_v9 }
  0x7e   :  { %v83_v11 = vsub.f32 %v2310_v0, %v81_v10 }
  0x80   :  { %v85_v12 = vmul.f32 %v83_v11, %v83_v11 }
  0x82   :  { %v87_v13 = vsel %vm67_vm0, %v85_v12, 0.0 }
  0x83   :  { %88 = vadd.xlane.f32.xlu0 %v87_v13 }
  0xf6   :  { %v89_v25 = vpop.xlane.xlu0 %88 }
  0xf7   :  { %v100_v26 = vmul.f32 %v2331_v24, %v89_v25 }
  0xf9   :  { %2082 = vrsqrt.f32 %v100_v26  ;;  %vm109_vm3 = vcmp.eq.f32.partialorder %v100_v26, inf  ;;  %v112_v34 = vand.u32 2147483648, %v100_v26  ;;  %vm111_vm4 = vcmp.eq.f32.partialorder %v100_v26, 0.0 }
  0xff   :  { %v2083_v27 = vpop.eup %2082 }
 0x100   :  { %v103_v28 = vmul.f32 %v2083_v27, %v100_v26 }
 0x102   :  { %v104_v29 = vmul.f32 %v2083_v27, %v103_v28 }
 0x104   :  { %v105_v30 = vmul.f32 0.5, %v104_v29 }
 0x106   :  { %v106_v31 = vsub.f32 1.5, %v105_v30 }
 0x108   :  { %v107_v32 = vmul.f32 %v2083_v27, %v106_v31 }
 0x10a   :  { %v108_v33 = vmul.f32 %v107_v32, %v100_v26 }
 0x10c   :  { %v110_v35 = vsel %vm109_vm3, %v100_v26, %v108_v33 }
 0x10d   :  { %v113_v36 = vsel %vm111_vm4, %v112_v34, %v110_v35 }
 0x10e   :  { %v126_v37 = vadd.f32 1e-06, %v113_v36 }
 0x110   :  { %2084 = vrcp.f32 %v126_v37  ;;  %v139_v41 = vand.u32 2147483648, %v126_v37  ;;  %v137_v43 = vand.u32 2147483647, %v126_v37  ;;  %vm133_vm6 = vweird.f32 %v126_v37 }
 0x112   :  { %v140_v45 = vor.u32 1.1754944e-38, %v139_v41  ;;  %vm138_vm8 = vcmp.eq.f32.partialorder %v137_v43, 8.507059e+37 }
 0x116   :  { %v2085_v38 = vpop.eup %2084 }
 0x117   :  { %v129_v39 = vmul.f32 %v2085_v38, %v126_v37  ;;  %vm134_vm5 = vweird.f32 %v2085_v38 }
 0x118   :  { %vm135_vm7 = vmor %vm133_vm6, %vm134_vm5 }
 0x119   :  { %v130_v40 = vsub.f32 1.0, %v129_v39 }
 0x11b   :  { %v131_v42 = vmul.f32 %v2085_v38, %v130_v40 }
 0x11d   :  { %v132_v44 = vadd.f32 %v2085_v38, %v131_v42 }
 0x11f   :  { %v136_v46 = vsel %vm135_vm7, %v2085_v38, %v132_v44 }
 0x120   :  { %v141_v47 = vsel %vm138_vm8, %v140_v45, %v136_v46 }
 0x121   :  { %v142_v48 = vmul.f32 %v141_v47, %v83_v11 }
 0x123   :  { %1968 = vmatmul.msk.f32.vlgmr.msra.gmra.mxu0 %vm67_vm0, %v142_v48 }
 0x1a0   :  { %v186_v50 = vpop.f32.mrf.mxu0 }
 0x1a1   :  { %v2341_v51 = vadd.f32 %v2338_v49, %v186_v50 }
 0x1a3   :  { %271 = vrot.lane.b32.xlu2 %v2341_v51, %s2227_s15  ;;  %194 = vrot.lane.b32.xlu1 %v2341_v51, %s2228_s16 }
 0x1ab   :  { %273 = vrot.lane.b32.xlu1 %v2341_v51, %s2229_s17 }
 0x1cc   :  { %72 = vadd.xlane.f32.xlu2 %v71_v53 }
 0x1e4   :  { %323 = vrot.lane.b32.xlu2 %v2341_v51, %s2230_s20 }
 0x1ec   :  { %349 = vrot.lane.b32.xlu2 %v2341_v51, %s2231_s21 }
 0x1fd   :  { %v272_v56 = vpop.permute.xlu2 %271 }
 0x215   :  { %v195_v54 = vpop.permute.xlu1 %194 }
 0x216   :  { %1970 = vmatpush.xpose.msk.msra.mxu1 %vm196_vm9, %v195_v54 }
 0x219   :  { %1971 = vmatmul.msk.f32.vlgmr.msra.gmra.mxu1 %vm196_vm9, %v2341_v51 }
 0x21d   :  { %v274_v55 = vpop.permute.xlu1 %273 }
 0x21e   :  { %1973 = vmatpush.xpose.msk.msra.mxu3 %vm196_vm9, %v274_v55 }
 0x221   :  { %1974 = vmatmul.msk.f32.vlgmr.msra.gmra.mxu3 %vm196_vm9, %v272_v56 }
 0x23f   :  { %v73_v57 = vpop.xlane.xlu2 %72 }
 0x240   :  { %v82_v58 = vmul.f32 %v2314_v8, %v73_v57 }
 0x242   :  { %v2372_v61 = vsub.f32 %v2352_v52, %v82_v58 }
 0x244   :  { %v86_v1 = vmul.f32 %v2372_v61, %v2372_v61 }
 0x246   :  { %v90_v2 = vsel %vm67_vm0, %v86_v1, 0.0 }
 0x247   :  { %v324_v30 = vpop.permute.xlu2 %323 }
 0x24f   :  { %v350_v35 = vpop.permute.xlu2 %349 }
 0x296   :  { %v218_v60 = vpop.f32.mrf.mxu1 }
 0x297   :  { %v219_v62 = vadd.f32 %v218_v60, %v2369_v59 }
 0x299   :  { %v221_v63 = vsel %vm196_vm9, %v219_v62, -inf }
 0x29a   :  { %222 = vmax.xlane.f32.xlu0 %v221_v63 }
 0x2a2   :  { %91 = vadd.xlane.f32.xlu0 %v90_v2 }
 0x2a4   :  { %v296_v3 = vpop.f32.mrf.mxu3 }
 0x2a5   :  { %v297_v4 = vadd.f32 %v296_v3, %v2369_v59 }
 0x2a7   :  { %v299_v5 = vsel %vm196_vm9, %v297_v4, -inf }
 0x2a8   :  { %300 = vmax.xlane.f32.xlu1 %v299_v5 }
 0x2b6   :  { %245 = vrot.lane.b32.xlu0 %v2341_v51, %s2232_s25 }
 0x2be   :  { %429 = vrot.lane.b32.xlu0 %v2341_v51, %s2233_s8 }
 0x2c1   :  { %351 = vrot.lane.b32.xlu1 %v2341_v51, %s2234_s26 }
 0x30d   :  { %v223_v6 = vpop.xlane.xlu0 %222 }
 0x30e   :  { %v224_v7 = vsub.f32 %v219_v62, %v223_v6 }
 0x310   :  { %v225_v9 = vmul.f32 1.442695, %v224_v7 }
 0x312   :  { %2086 = vpow2.f32 %v225_v9 }
 0x315   :  { %v92_v10 = vpop.xlane.xlu0 %91 }
 0x316   :  { %v101_v11 = vmul.f32 %v2331_v24, %v92_v10 }
 0x318   :  { %v2388_v12 = vpop.eup %2086  ;;  %2088 = vrsqrt.f32 %v101_v11  ;;  %vm121_vm10 = vcmp.eq.f32.partialorder %v101_v11, inf  ;;  %v124_v27 = vand.u32 2147483648, %v101_v11  ;;  %vm123_vm11 = vcmp.eq.f32.partialorder %v101_v11, 0.0 }
 0x319   :  { %v227_v13 = vsel %vm196_vm9, %v2388_v12, 0.0 }
 0x31a   :  { %228 = vadd.xlane.f32.xlu0 %v227_v13 }
 0x31b   :  { %v301_v14 = vpop.xlane.xlu1 %300 }
 0x31c   :  { %v302_v15 = vsub.f32 %v297_v4, %v301_v14 }
 0x31e   :  { %v2089_v16 = vpop.eup %2088  ;;  %v303_v17 = vmul.f32 1.442695, %v302_v15 }
 0x31f   :  { %v115_v18 = vmul.f32 %v2089_v16, %v101_v11 }
 0x320   :  { %2090 = vpow2.f32 %v303_v17 }
 0x321   :  { %v116_v19 = vmul.f32 %v2089_v16, %v115_v18 }
 0x323   :  { %v117_v20 = vmul.f32 0.5, %v116_v19 }
 0x325   :  { %v118_v21 = vsub.f32 1.5, %v117_v20 }
 0x326   :  { %v2392_v22 = vpop.eup %2090 }
 0x327   :  { %v119_v23 = vmul.f32 %v2089_v16, %v118_v21  ;;  %v305_v25 = vsel %vm196_vm9, %v2392_v22, 0.0 }
 0x328   :  { %v246_v26 = vpop.permute.xlu0 %245  ;;  %306 = vadd.xlane.f32.xlu0 %v305_v25 }
 0x329   :  { %v120_v28 = vmul.f32 %v119_v23, %v101_v11  ;;  %266 = vmatpush.msrb.mxu2 %v246_v26 }
 0x32b   :  { %v122_v29 = vsel %vm121_vm10, %v101_v11, %v120_v28 }
 0x32c   :  { %v125_v31 = vsel %vm123_vm11, %v124_v27, %v122_v29 }
 0x32d   :  { %v127_v32 = vadd.f32 1e-06, %v125_v31 }
 0x32f   :  { %2092 = vrcp.f32 %v127_v32  ;;  %v154_v37 = vand.u32 2147483648, %v127_v32  ;;  %vm148_vm12 = vweird.f32 %v127_v32  ;;  %v152_v39 = vand.u32 2147483647, %v127_v32 }
 0x330   :  { %v430_v46 = vpop.permute.xlu0 %429 }
 0x331   :  { %v155_v41 = vor.u32 1.1754944e-38, %v154_v37  ;;  %vm153_vm15 = vcmp.eq.f32.partialorder %v152_v39, 8.507059e+37 }
 0x333   :  { %v352_v33 = vpop.permute.xlu1 %351 }
 0x334   :  { %1976 = vmatpush.xpose.msk.msrb.mxu1 %vm196_vm9, %v352_v33 }
 0x335   :  { %v2093_v34 = vpop.eup %2092 }
 0x336   :  { %v144_v36 = vmul.f32 %v2093_v34, %v127_v32  ;;  %vm149_vm13 = vweird.f32 %v2093_v34 }
 0x337   :  { %1977 = vmatmul.msk.f32.vlgmr.msrb.gmra.mxu1 %vm196_vm9, %v350_v35  ;;  %vm150_vm14 = vmor %vm148_vm12, %vm149_vm13 }
 0x338   :  { %v145_v38 = vsub.f32 1.0, %v144_v36 }
 0x33a   :  { %v146_v40 = vmul.f32 %v2093_v34, %v145_v38 }
 0x33c   :  { %427 = vrot.lane.b32.xlu0 %v2341_v51, %s2235_s27  ;;  %v147_v42 = vadd.f32 %v2093_v34, %v146_v40 }
 0x33e   :  { %v151_v43 = vsel %vm150_vm14, %v2093_v34, %v147_v42 }
 0x33f   :  { %v156_v44 = vsel %vm153_vm15, %v155_v41, %v151_v43 }
 0x340   :  { %v157_v45 = vmul.f32 %v156_v44, %v2372_v61 }
 0x342   :  { %1969 = vmatmul.msk.f32.vlgmr.msra.gmra.mxu2 %vm67_vm0, %v157_v45 }
 0x343   :  { %344 = vmatpush.msra.mxu2 %v324_v30 }
 0x38d   :  { %v229_v47 = vpop.xlane.xlu0 %228 }
 0x38e   :  { %2094 = vrcp.f32 %v229_v47  ;;  %v241_v54 = vand.u32 2147483648, %v229_v47  ;;  %v239_v56 = vand.u32 2147483647, %v229_v47  ;;  %vm235_vm2 = vweird.f32 %v229_v47 }
 0x390   :  { %v242_v60 = vor.u32 1.1754944e-38, %v241_v54  ;;  %vm240_vm4 = vcmp.eq.f32.partialorder %v239_v56, 8.507059e+37 }
 0x394   :  { %v2095_v48 = vpop.eup %2094 }
 0x395   :  { %v231_v50 = vmul.f32 %v2095_v48, %v229_v47  ;;  %vm236_vm1 = vweird.f32 %v2095_v48 }
 0x396   :  { %vm237_vm3 = vmor %vm235_vm2, %vm236_vm1 }
 0x397   :  { %v232_v53 = vsub.f32 1.0, %v231_v50 }
 0x399   :  { %v233_v55 = vmul.f32 %v2095_v48, %v232_v53 }
 0x39b   :  { %v234_v57 = vadd.f32 %v2095_v48, %v233_v55  ;;  %v307_v58 = vpop.xlane.xlu0 %306 }
 0x39c   :  { %2096 = vrcp.f32 %v307_v58  ;;  %v319_v4 = vand.u32 2147483648, %v307_v58  ;;  %v317_v6 = vand.u32 2147483647, %v307_v58  ;;  %vm313_vm6 = vweird.f32 %v307_v58 }
 0x39d   :  { %v238_v61 = vsel %vm237_vm3, %v2095_v48, %v234_v57  ;;  %vm518_vm3 = vcmask 130048  }
 0x39e   :  { %v243_v62 = vsel %vm240_vm4, %v242_v60, %v238_v61  ;;  %v320_v9 = vor.u32 1.1754944e-38, %v319_v4  ;;  %vm318_vm8 = vcmp.eq.f32.partialorder %v317_v6, 8.507059e+37  ;;  %vm520_vm4 = vcmask 195584  }
 0x39f   :  { %v244_v63 = vmul.f32 %v2388_v12, %v243_v62 }
 0x3a1   :  { %1972 = vmatmul.msk.f32.vlgmr.msrb.gmra.mxu2 %vm196_vm9, %v244_v63 }
 0x3a2   :  { %v2097_v1 = vpop.eup %2096  ;;  %1979 = vmatpush.xpose.msk.msrb.mxu2 %vm196_vm9, %v430_v46 }
 0x3a3   :  { %v309_v2 = vmul.f32 %v2097_v1, %v307_v58  ;;  %vm314_vm5 = vweird.f32 %v2097_v1 }
 0x3a4   :  { %vm315_vm7 = vmor %vm313_vm6, %vm314_vm5 }
 0x3a5   :  { %v310_v3 = vsub.f32 1.0, %v309_v2 }
 0x3a7   :  { %v311_v5 = vmul.f32 %v2097_v1, %v310_v3 }
 0x3a9   :  { %v312_v7 = vadd.f32 %v2097_v1, %v311_v5 }
 0x3ab   :  { %v316_v10 = vsel %vm315_vm7, %v2097_v1, %v312_v7  ;;  %v1982_v7 = vld [vmem:[%s2867_s2 + $0x8] sm:$0xff] }
 0x3ac   :  { %v321_v11 = vsel %vm318_vm8, %v320_v9, %v316_v10 }
 0x3ad   :  { %v322_v12 = vmul.f32 %v2392_v22, %v321_v11 }
 0x3ae   :  { %v428_v15 = vpop.permute.xlu0 %427 }
 0x3af   :  { %1975 = vmatmul.msk.f32.vlgmr.msra.gmra.mxu2 %vm196_vm9, %v322_v12 }
 0x3b4   :  { %v374_v13 = vpop.f32.mrf.mxu1 }
 0x3b5   :  { %v375_v14 = vadd.f32 %v374_v13, %v2369_v59 }
 0x3b7   :  { %1980 = vmatmul.msk.f32.vlgmr.msrb.gmra.mxu2 %vm196_vm9, %v428_v15  ;;  %v377_v16 = vsel %vm196_vm9, %v375_v14, -inf }
 0x3b8   :  { %378 = vmax.xlane.f32.xlu2 %v377_v16 }
 0x3c5   :  { %v189_v17 = vpop.f32.mrf.mxu2 }
 0x3c6   :  { %v2411_v18 = vadd.f32 %v2338_v49, %v189_v17 }
 0x3d0   :  { %525 = vrot.lane.b32.xlu2 %v2411_v18, %s2228_s16 }
 0x424   :  { %v2415_v19 = vpop.f32.mrf.mxu2 }
 0x42b   :  { %v379_v20 = vpop.xlane.xlu2 %378 }
 0x42c   :  { %v380_v21 = vsub.f32 %v375_v14, %v379_v20 }
 0x42e   :  { %v381_v22 = vmul.f32 1.442695, %v380_v21 }
 0x430   :  { %2098 = vpow2.f32 %v381_v22 }
 0x432   :  { %v346_v23 = vpop.f32.mrf.mxu2 }
 0x433   :  { %v526_v47 = vpop.permute.xlu2 %525 }
 0x436   :  { %v2099_v25 = vpop.eup %2098 }
 0x437   :  { %v383_v26 = vsel %vm196_vm9, %v2099_v25, 0.0 }
 0x438   :  { %384 = vadd.xlane.f32.xlu0 %v383_v26 }
 0x43a   :  { %v452_v27 = vpop.f32.mrf.mxu2 }
 0x43b   :  { %v453_v28 = vadd.f32 %v452_v27, %v2369_v59 }
 0x43d   :  { %v455_v49 = vsel %vm196_vm9, %v453_v28, -inf }
 0x43e   :  { %456 = vmax.xlane.f32.xlu1 %v455_v49 }
 0x44c   :  { %479 = vrot.lane.b32.xlu0 %v2341_v51, %s2236_s28 }
 0x454   :  { %603 = vrot.lane.b32.xlu0 %v2411_v18, %s2229_s17 }
 0x457   :  { %401 = vrot.lane.b32.xlu1 %v2341_v51, %s2237_s29 }
 0x45c   :  { %681 = vrot.lane.b32.xlu0 %v2411_v18, %s2234_s26 }
 0x45f   :  { %601 = vrot.lane.b32.xlu1 %v2411_v18, %s2227_s15 }
 0x464   :  { %757 = vrot.lane.b32.xlu0 %v2411_v18, %s2235_s27 }
 0x467   :  { %679 = vrot.lane.b32.xlu1 %v2411_v18, %s2231_s21 }
 0x4ab   :  { %v385_v59 = vpop.xlane.xlu0 %384 }
 0x4ac   :  { %2100 = vrcp.f32 %v385_v59  ;;  %v397_v39 = vand.u32 2147483648, %v385_v59  ;;  %vm391_vm11 = vweird.f32 %v385_v59  ;;  %v395_v40 = vand.u32 2147483647, %v385_v59 }
 0x4ae   :  { %v398_v42 = vor.u32 1.1754944e-38, %v397_v39  ;;  %vm396_vm13 = vcmp.eq.f32.partialorder %v395_v40, 8.507059e+37 }
 0x4b1   :  { %v457_v29 = vpop.xlane.xlu1 %456 }
 0x4b2   :  { %v2101_v30 = vpop.eup %2100  ;;  %v458_v31 = vsub.f32 %v453_v28, %v457_v29 }
 0x4b3   :  { %v387_v32 = vmul.f32 %v2101_v30, %v385_v59  ;;  %vm392_vm10 = vweird.f32 %v2101_v30 }
 0x4b4   :  { %v459_v33 = vmul.f32 1.442695, %v458_v31  ;;  %vm393_vm12 = vmor %vm391_vm11, %vm392_vm10 }
 0x4b5   :  { %v388_v51 = vsub.f32 1.0, %v387_v32 }
 0x4b6   :  { %2102 = vpow2.f32 %v459_v33  ;;  %v853_v33 = vld [vmem:[%s2869_s4 + $0x18] sm:$0xff] }
 0x4b7   :  { %v389_v34 = vmul.f32 %v2101_v30, %v388_v51  ;;  %v852_v51 = vld [vmem:[%s2869_s4 + $0x10] sm:$0xff] }
 0x4b9   :  { %v390_v38 = vadd.f32 %v2101_v30, %v389_v34  ;;  %v851_v34 = vld [vmem:[%s2869_s4 + $0x8] sm:$0xff] }
 0x4bb   :  { %v394_v41 = vsel %vm393_vm12, %v2101_v30, %v390_v38 }
 0x4bc   :  { %v2103_v35 = vpop.eup %2102  ;;  %v399_v44 = vsel %vm396_vm13, %v398_v42, %v394_v41 }
 0x4bd   :  { %v461_v36 = vsel %vm196_vm9, %v2103_v35, 0.0  ;;  %v400_v46 = vmul.f32 %v2099_v25, %v399_v44 }
 0x4be   :  { %v480_v37 = vpop.permute.xlu0 %479  ;;  %462 = vadd.xlane.f32.xlu2 %v461_v36 }
 0x4bf   :  { %500 = vmatpush.msra.mxu1 %v480_v37  ;;  %v850_v37 = vld [vmem:[%s2869_s4] sm:$0xff] }
 0x4c6   :  { %v604_v43 = vpop.permute.xlu0 %603 }
 0x4c7   :  { %1986 = vmatpush.xpose.msk.msra.mxu2 %vm196_vm9, %v604_v43 }
 0x4c9   :  { %v402_v45 = vpop.permute.xlu1 %401 }
 0x4ca   :  { %422 = vmatpush.msrb.mxu3 %v402_v45 }
 0x4cb   :  { %1978 = vmatmul.msk.f32.vlgmr.msrb.gmra.mxu3 %vm196_vm9, %v400_v46 }
 0x4cc   :  { %1983 = vmatpush.xpose.msk.msra.mxu3 %vm196_vm9, %v526_v47 }
 0x4ce   :  { %v682_v48 = vpop.permute.xlu0 %681 }
 0x4d0   :  { %1989 = vmatpush.xpose.msk.msrb.mxu3 %vm196_vm9, %v682_v48 }
 0x4d1   :  { %v602_v50 = vpop.permute.xlu1 %601 }
 0x4d2   :  { %1987 = vmatmul.msk.f32.vlgmr.msra.gmra.mxu2 %vm196_vm9, %v602_v50 }
 0x4d3   :  { %1984 = vmatmul.msk.f32.vlgmr.msra.gmra.mxu3 %vm196_vm9, %v2411_v18 }
 0x4d4   :  { %872 = vmatpush.msra.mxu3 %v853_v33 }
 0x4d6   :  { %759 = vrot.lane.b32.xlu2 %v2411_v18, %s2233_s8  ;;  %v758_v60 = vpop.permute.xlu0 %757  ;;  %873 = vmatpush.msra.mxu3 %v852_v51 }
 0x4d8   :  { %874 = vmatpush.msra.mxu3 %v851_v34 }
 0x4d9   :  { %v680_v53 = vpop.permute.xlu1 %679 }
 0x4da   :  { %875 = vmatpush.msra.mxu3 %v850_v37 }
 0x4db   :  { %1990 = vmatmul.msk.f32.vlgmr.msrb.gmra.mxu3 %vm196_vm9, %v680_v53 }
 0x4de   :  { %506 = vrot.lane.b32.xlu2 %v346_v23, %s2224_s23 }
 0x531   :  { %v463_v54 = vpop.xlane.xlu2 %462 }
 0x532   :  { %2104 = vrcp.f32 %v463_v54  ;;  %v475_v61 = vand.u32 2147483648, %v463_v54  ;;  %v473_v63 = vand.u32 2147483647, %v463_v54  ;;  %vm469_vm15 = vweird.f32 %v463_v54 }
 0x534   :  { %v476_v2 = vor.u32 1.1754944e-38, %v475_v61  ;;  %vm474_vm2 = vcmp.eq.f32.partialorder %v473_v63, 8.507059e+37 }
 0x538   :  { %v2105_v55 = vpop.eup %2104 }
 0x539   :  { %v465_v56 = vmul.f32 %v2105_v55, %v463_v54  ;;  %v760_v57 = vpop.permute.xlu2 %759  ;;  %vm470_vm14 = vweird.f32 %v2105_v55 }
 0x53a   :  { %1992 = vmatpush.xpose.msk.msrb.mxu2 %vm196_vm9, %v760_v57  ;;  %vm471_vm1 = vmor %vm469_vm15, %vm470_vm14 }
 0x53b   :  { %v466_v58 = vsub.f32 1.0, %v465_v56 }
 0x53d   :  { %v467_v62 = vmul.f32 %v2105_v55, %v466_v58  ;;  %1993 = vmatmul.msk.f32.vlgmr.msrb.gmra.mxu2 %vm196_vm9, %v758_v60 }
 0x53f   :  { %v468_v1 = vadd.f32 %v2105_v55, %v467_v62 }
 0x541   :  { %v472_v3 = vsel %vm471_vm1, %v2105_v55, %v468_v1  ;;  %v507_v21 = vpop.permute.xlu2 %506 }
 0x542   :  { %v477_v4 = vsel %vm474_vm2, %v476_v2, %v472_v3  ;;  %v517_v38 = vsel %vm196_vm9, %v2415_v19, %v507_v21 }
 0x543   :  { %v478_v5 = vmul.f32 %v2103_v35, %v477_v4 }
 0x545   :  { %1981 = vmatmul.msk.f32.vlgmr.msra.gmra.mxu1 %vm196_vm9, %v478_v5 }
 0x54e   :  { %v424_v6 = vpop.f32.mrf.mxu3 }
 0x54f   :  { %510 = vrot.lane.b32.xlu1 %v424_v6, %s2238_s30  ;;  %v2504_v6 = vld [vmem:[%s2875_s10 + $0x1] ss:$0 sm:$0xff] }
 0x555   :  { %v626_v12 = vpop.f32.mrf.mxu2 }
 0x556   :  { %v548_v9 = vpop.f32.mrf.mxu3  ;;  %v627_v13 = vadd.f32 %v1982_v7, %v626_v12 }
 0x557   :  { %v549_v10 = vadd.f32 %v1982_v7, %v548_v9 }
 0x558   :  { %v629_v14 = vsel %vm196_vm9, %v627_v13, -inf }
 0x559   :  { %v551_v11 = vsel %vm196_vm9, %v549_v10, -inf }
 0x55a   :  { %552 = vmax.xlane.f32.xlu2 %v551_v11 }
 0x55e   :  { %v704_v49 = vpop.f32.mrf.mxu3 }
 0x55f   :  { %v705_v59 = vadd.f32 %v1982_v7, %v704_v49 }
 0x561   :  { %v707_v30 = vsel %vm196_vm9, %v705_v59, -inf }
 0x579   :  { %630 = vmax.xlane.f32.xlu1 %v629_v14 }
 0x5c0   :  { %v782_v15 = vpop.f32.mrf.mxu2 }
 0x5c1   :  { %v783_v16 = vadd.f32 %v1982_v7, %v782_v15  ;;  %v511_v28 = vpop.permute.xlu1 %510 }
 0x5c2   :  { %v502_v17 = vpop.f32.mrf.mxu1  ;;  %v519_v39 = vsel %vm518_vm3, %v517_v38, %v511_v28 }
 0x5c3   :  { %514 = vrot.lane.b32.xlu0 %v502_v17, %s2239_s3  ;;  %v785_v20 = vsel %vm196_vm9, %v783_v16, -inf }
 0x5c4   :  { %786 = vmax.xlane.f32.xlu2 %v785_v20 }
 0x5cd   :  { %v553_v22 = vpop.xlane.xlu2 %552 }
 0x5ce   :  { %v554_v23 = vsub.f32 %v549_v10, %v553_v22 }
 0x5d0   :  { %v555_v25 = vmul.f32 1.442695, %v554_v23 }
 0x5d2   :  { %2106 = vpow2.f32 %v555_v25 }
 0x5d8   :  { %v2457_v26 = vpop.eup %2106 }
 0x5d9   :  { %v557_v27 = vsel %vm196_vm9, %v2457_v26, 0.0 }
 0x5da   :  { %558 = vadd.xlane.f32.xlu1 %v557_v27 }
 0x5ec   :  { %v631_v29 = vpop.xlane.xlu1 %630 }
 0x5ed   :  { %v632_v31 = vsub.f32 %v627_v13, %v631_v29  ;;  %708 = vmax.xlane.f32.xlu0 %v707_v30 }
 0x5ef   :  { %v633_v32 = vmul.f32 1.442695, %v632_v31 }
 0x5f1   :  { %2108 = vpow2.f32 %v633_v32 }
 0x5f7   :  { %v2471_v35 = vpop.eup %2108 }
 0x5f8   :  { %v635_v36 = vsel %vm196_vm9, %v2471_v35, 0.0 }
 0x5f9   :  { %636 = vadd.xlane.f32.xlu2 %v635_v36 }
 0x611   :  { %575 = vrot.lane.b32.xlu2 %v2411_v18, %s2232_s25 }
 0x635   :  { %v515_v40 = vpop.permute.xlu0 %514 }
 0x636   :  { %v521_v41 = vsel %vm520_vm4, %v519_v39, %v515_v40 }
 0x637   :  { %v787_v42 = vpop.xlane.xlu2 %786  ;;  %1995 = vmatmul.msk.f32.vlgmr.msra.gmra.mxu3 %vm67_vm0, %v521_v41 }
 0x638   :  { %v788_v43 = vsub.f32 %v783_v16, %v787_v42 }
 0x63a   :  { %v789_v44 = vmul.f32 1.442695, %v788_v43 }
 0x63c   :  { %2110 = vpow2.f32 %v789_v44 }
 0x642   :  { %v2485_v45 = vpop.eup %2110 }
 0x643   :  { %v791_v46 = vsel %vm196_vm9, %v2485_v45, 0.0 }
 0x644   :  { %792 = vadd.xlane.f32.xlu1 %v791_v46 }
 0x64d   :  { %v559_v47 = vpop.xlane.xlu1 %558 }
 0x64e   :  { %2112 = vrcp.f32 %v559_v47  ;;  %v571_v60 = vand.u32 2147483648, %v559_v47  ;;  %vm565_vm6 = vweird.f32 %v559_v47  ;;  %v569_v61 = vand.u32 2147483647, %v559_v47 }
 0x650   :  { %v572_v2 = vor.u32 1.1754944e-38, %v571_v60  ;;  %vm570_vm8 = vcmp.eq.f32.partialorder %v569_v61, 8.507059e+37  ;;  %v64_v60 = vld [vmem:[%s2866_s1] sm:$0xff] }
 0x654   :  { %v2113_v19 = vpop.eup %2112 }
 0x655   :  { %v561_v48 = vmul.f32 %v2113_v19, %v559_v47  ;;  %vm566_vm5 = vweird.f32 %v2113_v19 }
 0x656   :  { %vm567_vm7 = vmor %vm565_vm6, %vm566_vm5 }
 0x657   :  { %v562_v54 = vsub.f32 1.0, %v561_v48 }
 0x659   :  { %v563_v56 = vmul.f32 %v2113_v19, %v562_v54 }
 0x65b   :  { %v564_v57 = vadd.f32 %v2113_v19, %v563_v56  ;;  %v1001_v56 = vld [vmem:[%s2871_s6 + $0x18] sm:$0xff] }
 0x65c   :  { %1024 = vmatpush.msra.mxu2 %v1001_v56 }
 0x65d   :  { %731 = vrot.lane.b32.xlu1 %v2411_v18, %s2237_s29  ;;  %v568_v1 = vsel %vm567_vm7, %v2113_v19, %v564_v57  ;;  %v999_v57 = vld [vmem:[%s2871_s6 + $0x8] sm:$0xff] }
 0x65e   :  { %v573_v3 = vsel %vm570_vm8, %v572_v2, %v568_v1  ;;  %v65_v2 = vld [vmem:[%s2866_s1 + $0x8] sm:$0xff] }
 0x65f   :  { %v574_v5 = vmul.f32 %v2457_v26, %v573_v3  ;;  %v66_v3 = vld [vmem:[%s2866_s1 + $0x10] sm:$0xff] }
 0x660   :  { %v709_v50 = vpop.xlane.xlu0 %708 }
 0x661   :  { %v710_v53 = vsub.f32 %v705_v59, %v709_v50 }
 0x663   :  { %v711_v55 = vmul.f32 1.442695, %v710_v53 }
 0x665   :  { %2114 = vpow2.f32 %v711_v55 }
 0x66b   :  { %v2491_v58 = vpop.eup %2114 }
 0x66c   :  { %v637_v62 = vpop.xlane.xlu2 %636  ;;  %v713_v63 = vsel %vm196_vm9, %v2491_v58, 0.0 }
 0x66d   :  { %714 = vadd.xlane.f32.xlu0 %v713_v63  ;;  %2116 = vrcp.f32 %v637_v62  ;;  %v649_v26 = vand.u32 2147483648, %v637_v62  ;;  %vm643_vm11 = vweird.f32 %v637_v62  ;;  %v647_v28 = vand.u32 2147483647, %v637_v62 }
 0x66f   :  { %v650_v32 = vor.u32 1.1754944e-38, %v649_v26  ;;  %vm648_vm15 = vcmp.eq.f32.partialorder %v647_v28, 8.507059e+37 }
 0x674   :  { %v576_v4 = vpop.permute.xlu2 %575 }
 0x675   :  { %596 = vmatpush.msrb.mxu0 %v576_v4  ;;  %v967_v4 = vld [vmem:[%s2870_s5 + $0x18] sm:$0xff] }
 0x676   :  { %1985 = vmatmul.msk.f32.vlgmr.msrb.gmra.mxu0 %vm196_vm9, %v574_v5  ;;  %v966_v5 = vld [vmem:[%s2870_s5 + $0x10] sm:$0xff] }
 0x681   :  { %653 = vrot.lane.b32.xlu0 %v2411_v18, %s2230_s20 }
 0x689   :  { %809 = vrot.lane.b32.xlu0 %v2411_v18, %s2236_s28  ;;  %v2117_v18 = vpop.eup %2116 }
 0x68a   :  { %v639_v14 = vmul.f32 %v2117_v18, %v637_v62  ;;  %vm644_vm10 = vweird.f32 %v2117_v18 }
 0x68b   :  { %vm645_vm12 = vmor %vm643_vm11, %vm644_vm10 }
 0x68c   :  { %v640_v16 = vsub.f32 1.0, %v639_v14 }
 0x68e   :  { %v641_v20 = vmul.f32 %v2117_v18, %v640_v16 }
 0x690   :  { %v642_v23 = vadd.f32 %v2117_v18, %v641_v20 }
 0x692   :  { %v646_v30 = vsel %vm645_vm12, %v2117_v18, %v642_v23 }
 0x693   :  { %v651_v34 = vsel %vm648_vm15, %v650_v32, %v646_v30 }
 0x694   :  { %v652_v43 = vmul.f32 %v2471_v35, %v651_v34 }
 0x6b7   :  { %v793_v12 = vpop.xlane.xlu1 %792 }
 0x6b8   :  { %2118 = vrcp.f32 %v793_v12  ;;  %v805_v39 = vand.u32 2147483648, %v793_v12  ;;  %vm799_vm6 = vweird.f32 %v793_v12  ;;  %v803_v41 = vand.u32 2147483647, %v793_v12 }
 0x6ba   :  { %v877_v7 = vpop.f32.mrf.mxu3  ;;  %v806_v46 = vor.u32 1.1754944e-38, %v805_v39  ;;  %vm804_vm8 = vcmp.eq.f32.partialorder %v803_v41, 8.507059e+37  ;;  %v2073_v41 = vld [vmem:[%s2875_s10 + $0x3] ss:$0 sm:$0xff] }
 0x6bb   :  { %v883_v9 = vadd.f32 %v877_v7, %v2310_v0  ;;  %v965_v7 = vld [vmem:[%s2870_s5 + $0x8] sm:$0xff] }
 0x6bd   :  { %v2508_v10 = vadd.f32 %v2504_v6, %v883_v9  ;;  %v964_v9 = vld [vmem:[%s2870_s5] sm:$0xff] }
 0x6be   :  { %v2119_v17 = vpop.eup %2118 }
 0x6bf   :  { %v888_v11 = vsel %vm67_vm0, %v2508_v10, 0.0  ;;  %v795_v0 = vmul.f32 %v2119_v17, %v793_v12  ;;  %vm800_vm5 = vweird.f32 %v2119_v17 }
 0x6c0   :  { %889 = vadd.xlane.f32.xlu2 %v888_v11  ;;  %vm801_vm7 = vmor %vm799_vm6, %vm800_vm5 }
 0x6c1   :  { %v796_v25 = vsub.f32 1.0, %v795_v0 }
 0x6c3   :  { %v797_v31 = vmul.f32 %v2119_v17, %v796_v25 }
 0x6c5   :  { %v798_v37 = vadd.f32 %v2119_v17, %v797_v31 }
 0x6c7   :  { %v802_v44 = vsel %vm801_vm7, %v2119_v17, %v798_v37 }
 0x6c8   :  { %v807_v47 = vsel %vm804_vm8, %v806_v46, %v802_v44  ;;  %v2589_v46 = vld [vmem:[%s2875_s10 + $0x2] ss:$0 sm:$0xff] }
 0x6c9   :  { %v808_v48 = vmul.f32 %v2485_v45, %v807_v47  ;;  %v1000_v45 = vld [vmem:[%s2871_s6 + $0x10] sm:$0xff] }
 0x6ca   :  { %1025 = vmatpush.msra.mxu2 %v1000_v45 }
 0x6cc   :  { %1026 = vmatpush.msra.mxu2 %v999_v57 }
 0x6cf   :  { %v732_v13 = vpop.permute.xlu1 %731 }
 0x6d0   :  { %752 = vmatpush.msra.mxu0 %v732_v13 }
 0x6d2   :  { %987 = vmatpush.msrb.mxu0 %v967_v4 }
 0x6d4   :  { %988 = vmatpush.msrb.mxu0 %v966_v5 }
 0x6d6   :  { %989 = vmatpush.msrb.mxu0 %v965_v7 }
 0x6d8   :  { %990 = vmatpush.msrb.mxu0 %v964_v9 }
 0x6e0   :  { %v715_v15 = vpop.xlane.xlu0 %714 }
 0x6e1   :  { %2120 = vrcp.f32 %v715_v15  ;;  %v727_v49 = vand.u32 2147483648, %v715_v15  ;;  %v725_v29 = vand.u32 2147483647, %v715_v15  ;;  %vm721_vm14 = vweird.f32 %v715_v15 }
 0x6e3   :  { %v728_v51 = vor.u32 1.1754944e-38, %v727_v49  ;;  %vm726_vm2 = vcmp.eq.f32.partialorder %v725_v29, 8.507059e+37 }
 0x6e7   :  { %v2121_v21 = vpop.eup %2120 }
 0x6e8   :  { %v717_v22 = vmul.f32 %v2121_v21, %v715_v15  ;;  %vm722_vm13 = vweird.f32 %v2121_v21 }
 0x6e9   :  { %vm723_vm1 = vmor %vm721_vm14, %vm722_vm13 }
 0x6ea   :  { %v718_v27 = vsub.f32 1.0, %v717_v22 }
 0x6ec   :  { %v719_v59 = vmul.f32 %v2121_v21, %v718_v27 }
 0x6ee   :  { %v720_v33 = vadd.f32 %v2121_v21, %v719_v59 }
 0x6f0   :  { %v724_v36 = vsel %vm723_vm1, %v2121_v21, %v720_v33  ;;  %vm1100_vm1 = vcmask 1043456  }
 0x6f1   :  { %v729_v38 = vsel %vm726_vm2, %v728_v51, %v724_v36  ;;  %vm1067_vm2 = vcmask 97280  }
 0x6f2   :  { %v730_v40 = vmul.f32 %v2491_v58, %v729_v38  ;;  %v998_v58 = vld [vmem:[%s2871_s6] sm:$0xff] }
 0x6f3   :  { %v654_v42 = vpop.permute.xlu0 %653  ;;  %1027 = vmatpush.msra.mxu2 %v998_v58  ;;  %v598_v61 = vpop.f32.mrf.mxu0 }
 0x6f4   :  { %674 = vmatpush.msrb.mxu1 %v654_v42  ;;  %1991 = vmatmul.msk.f32.vlgmr.msra.gmra.mxu0 %vm196_vm9, %v730_v40 }
 0x6f5   :  { %1988 = vmatmul.msk.f32.vlgmr.msrb.gmra.mxu1 %vm196_vm9, %v652_v43  ;;  %1999 = vmatmul.msk.f32.vlgmr.msra.gmra.mxu2 %vm67_vm0, %v64_v60 }
 0x6fb   :  { %v810_v19 = vpop.permute.xlu0 %809 }
 0x6fc   :  { %830 = vmatpush.msra.mxu1 %v810_v19 }
 0x6fd   :  { %1994 = vmatmul.msk.f32.vlgmr.msra.gmra.mxu1 %vm196_vm9, %v808_v48  ;;  %2000 = vmatmul.msk.f32.gmra.mxu2 %vm67_vm0, %v65_v2 }
 0x705   :  { %2001 = vmatmul.msk.f32.gmra.mxu2 %vm67_vm0, %v66_v3 }
 0x733   :  { %v890_v50 = vpop.xlane.xlu2 %889 }
 0x734   :  { %v894_v53 = vmul.f32 %v890_v50, %v2314_v8 }
 0x736   :  { %v2520_v35 = vsub.f32 %v2508_v10, %v894_v53 }
 0x738   :  { %v898_v54 = vmul.f32 %v2520_v35, %v2520_v35 }
 0x73a   :  { %v900_v55 = vsel %vm67_vm0, %v898_v54, 0.0 }
 0x73b   :  { %901 = vadd.xlane.f32.xlu0 %v900_v55 }
 0x771   :  { %v754_v63 = vpop.f32.mrf.mxu0 }
 0x772   :  { %v676_v62 = vpop.f32.mrf.mxu1 }
 0x773   :  { %836 = vrot.lane.b32.xlu1 %v676_v62, %s2224_s23 }
 0x778   :  { %v1029_v40 = vpop.f32.mrf.mxu2 }
 0x779   :  { %v2580_v44 = vadd.f32 %v2073_v41, %v1029_v40 }
 0x77a   :  { %v832_v1 = vpop.f32.mrf.mxu1 }
 0x77b   :  { %840 = vrot.lane.b32.xlu1 %v754_v63, %s2238_s30 }
 0x780   :  { %v1032_v42 = vpop.f32.mrf.mxu2 }
 0x781   :  { %v2574_v43 = vadd.f32 %v2073_v41, %v1032_v42 }
 0x783   :  { %844 = vrot.lane.b32.xlu1 %v832_v1, %s2239_s3  ;;  %2002 = vmatpush.xpose.msk.msrb.mxu1 %vm196_vm9, %v2574_v43 }
 0x787   :  { %2003 = vmatpush.xpose.msk.msrb.mxu1 %vm196_vm9, %v2580_v44 }
 0x788   :  { %v1035_v48 = vpop.f32.mrf.mxu2 }
 0x789   :  { %v1036_v50 = vadd.f32 %v2073_v41, %v1035_v48 }
 0x78b   :  { %1127 = vrot.lane.b32.xlu1 %v2574_v43, %s2227_s15  ;;  %v2596_v53 = vrot.slane %v1036_v50, 4 }
 0x793   :  { %1125 = vrot.lane.b32.xlu1 %v2580_v44, %s2227_s15 }
 0x7ae   :  { %v902_v11 = vpop.xlane.xlu0 %901 }
 0x7af   :  { %v906_v12 = vmul.f32 %v902_v11, %v2331_v24 }
 0x7b1   :  { %2122 = vrsqrt.f32 %v906_v12  ;;  %vm915_vm10 = vcmp.eq.f32.partialorder %v906_v12, inf  ;;  %v918_v0 = vand.u32 2147483648, %v906_v12  ;;  %vm917_vm11 = vcmp.eq.f32.partialorder %v906_v12, 0.0 }
 0x7b7   :  { %v2123_v13 = vpop.eup %2122 }
 0x7b8   :  { %v909_v18 = vmul.f32 %v2123_v13, %v906_v12 }
 0x7ba   :  { %v910_v14 = vmul.f32 %v2123_v13, %v909_v18 }
 0x7bc   :  { %v911_v15 = vmul.f32 0.5, %v910_v14 }
 0x7be   :  { %v912_v16 = vsub.f32 1.5, %v911_v15 }
 0x7c0   :  { %v913_v17 = vmul.f32 %v2123_v13, %v912_v16  ;;  %v1397_v13 = vrot.slane %v2574_v43, 4 }
 0x7c2   :  { %v914_v20 = vmul.f32 %v913_v17, %v906_v12  ;;  %v2641_v18 = vsel %vm1100_vm1, %v1397_v13, %v2596_v53 }
 0x7c4   :  { %v916_v21 = vsel %vm915_vm10, %v906_v12, %v914_v20 }
 0x7c5   :  { %v919_v22 = vsel %vm917_vm11, %v918_v0, %v916_v21 }
 0x7c6   :  { %v932_v23 = vadd.f32 1e-06, %v919_v22 }
 0x7c8   :  { %2124 = vrcp.f32 %v932_v23  ;;  %v945_v28 = vand.u32 2147483648, %v932_v23  ;;  %v943_v59 = vand.u32 2147483647, %v932_v23  ;;  %vm939_vm13 = vweird.f32 %v932_v23 }
 0x7ca   :  { %v946_v30 = vor.u32 1.1754944e-38, %v945_v28  ;;  %vm944_vm15 = vcmp.eq.f32.partialorder %v943_v59, 8.507059e+37 }
 0x7ce   :  { %v2125_v25 = vpop.eup %2124 }
 0x7cf   :  { %v935_v26 = vmul.f32 %v2125_v25, %v932_v23  ;;  %vm940_vm12 = vweird.f32 %v2125_v25 }
 0x7d0   :  { %vm941_vm14 = vmor %vm939_vm13, %vm940_vm12 }
 0x7d1   :  { %v936_v27 = vsub.f32 1.0, %v935_v26 }
 0x7d3   :  { %v937_v49 = vmul.f32 %v2125_v25, %v936_v27 }
 0x7d5   :  { %v938_v29 = vadd.f32 %v2125_v25, %v937_v49 }
 0x7d7   :  { %v942_v31 = vsel %vm941_vm14, %v2125_v25, %v938_v29 }
 0x7d8   :  { %v947_v32 = vsel %vm944_vm15, %v946_v30, %v942_v31 }
 0x7d9   :  { %v948_v33 = vmul.f32 %v947_v32, %v2520_v35 }
 0x7db   :  { %1997 = vmatmul.msk.f32.vlgmr.msrb.gmra.mxu0 %vm67_vm0, %v948_v33 }
 0x7e5   :  { %v837_v51 = vpop.permute.xlu1 %836 }
 0x7e6   :  { %v847_v36 = vsel %vm196_vm9, %v598_v61, %v837_v51 }
 0x7ed   :  { %v841_v34 = vpop.permute.xlu1 %840 }
 0x7ee   :  { %v848_v37 = vsel %vm518_vm3, %v847_v36, %v841_v34 }
 0x7f5   :  { %v845_v38 = vpop.permute.xlu1 %844 }
 0x7f6   :  { %v849_v39 = vsel %vm520_vm4, %v848_v37, %v845_v38 }
 0x7f7   :  { %1996 = vmatmul.msk.f32.gmra.mxu3 %vm67_vm0, %v849_v39 }
 0x7fd   :  { %v1128_v45 = vpop.permute.xlu1 %1127 }
 0x7fe   :  { %2007 = vmatpush.xpose.msk.msrb.mxu3 %vm196_vm9, %v1128_v45 }
 0x805   :  { %v1126_v57 = vpop.permute.xlu1 %1125 }
 0x806   :  { %2008 = vmatpush.xpose.msk.msrb.mxu3 %vm196_vm9, %v1126_v57 }
 0x858   :  { %v992_v47 = vpop.f32.mrf.mxu0 }
 0x859   :  { %v993_v19 = vadd.f32 %v2589_v46, %v992_v47 }
 0x85b   :  { %1123 = vrot.lane.b32.xlu2 %v993_v19, %s2227_s15  ;;  %2004 = vmatmul.msk.f32.vlgmr.msrb.gmra.mxu1 %vm196_vm9, %v993_v19 }
 0x863   :  { %1179 = vrot.lane.b32.xlu2 %v2580_v44, %s2229_s17 }
 0x86b   :  { %1485 = vrot.lane.b32.xlu2 %v2596_v53, %s2227_s15 }
 0x87a   :  { %v880_v35 = vpop.f32.mrf.mxu3 }
 0x87b   :  { %v884_v54 = vadd.f32 %v880_v35, %v2352_v52 }
 0x87d   :  { %v2602_v55 = vadd.f32 %v2504_v6, %v884_v54 }
 0x87f   :  { %v891_v56 = vsel %vm67_vm0, %v2602_v55, 0.0 }
 0x880   :  { %892 = vadd.xlane.f32.xlu1 %v891_v56 }
 0x899   :  { %1181 = vrot.lane.b32.xlu1 %v2574_v43, %s2229_s17 }
 0x8a1   :  { %1299 = vrot.lane.b32.xlu1 %v2574_v43, %s2235_s27 }
 0x8a9   :  { %1297 = vrot.lane.b32.xlu1 %v2580_v44, %s2235_s27 }
 0x8b1   :  { %1295 = vrot.lane.b32.xlu1 %v993_v19, %s2235_s27 }
 0x8b5   :  { %v1124_v52 = vpop.permute.xlu2 %1123 }
 0x8b6   :  { %2009 = vmatmul.msk.f32.vlgmr.msrb.gmra.mxu3 %vm196_vm9, %v1124_v52 }
 0x8bd   :  { %v1180_v1 = vpop.permute.xlu2 %1179 }
 0x8d8   :  { %v1064_v4 = vpop.f32.mrf.mxu1 }
 0x8d9   :  { %v1068_v5 = vsel %vm1067_vm2, %v1064_v4, -inf }
 0x8f3   :  { %v893_v6 = vpop.xlane.xlu1 %892 }
 0x8f4   :  { %v895_v58 = vmul.f32 %v893_v6, %v2314_v8  ;;  %v1486_v6 = vpop.permute.xlu2 %1485 }
 0x8f6   :  { %v2618_v60 = vsub.f32 %v2602_v55, %v895_v58 }
 0x8f8   :  { %v899_v61 = vmul.f32 %v2618_v60, %v2618_v60 }
 0x8fa   :  { %v903_v62 = vsel %vm67_vm0, %v899_v61, 0.0 }
 0x8fb   :  { %904 = vadd.xlane.f32.xlu0 %v903_v62 }
 0x90b   :  { %v1182_v63 = vpop.permute.xlu1 %1181 }
 0x90c   :  { %2010 = vmatpush.msk.msra.mxu0 %vm1100_vm1, %v1182_v63 }
 0x90e   :  { %1204 = vmatpush.msra.mxu0 %v1180_v1 }
 0x90f   :  { %1094 = vrot.lane.b32.xlu0 %v2574_v43, %s2228_s16 }
 0x913   :  { %v1300_v2 = vpop.permute.xlu1 %1299 }
 0x914   :  { %2017 = vmatpush.xpose.msk.msrb.mxu0 %vm196_vm9, %v1300_v2 }
 0x917   :  { %1092 = vrot.lane.b32.xlu0 %v2580_v44, %s2228_s16 }
 0x91b   :  { %v1298_v3 = vpop.permute.xlu1 %1297 }
 0x91c   :  { %2018 = vmatpush.xpose.msk.msrb.mxu0 %vm196_vm9, %v1298_v3 }
 0x91f   :  { %1213 = vrot.lane.b32.xlu0 %v2574_v43, %s2231_s21 }
 0x927   :  { %1211 = vrot.lane.b32.xlu0 %v2580_v44, %s2231_s21 }
 0x92f   :  { %1209 = vrot.lane.b32.xlu0 %v993_v19, %s2231_s21 }
 0x939   :  { %v1152_v7 = vpop.f32.mrf.mxu3 }
 0x93a   :  { %v1155_v9 = vsel %vm1067_vm2, %v1152_v7, -inf }
 0x959   :  { %1069 = vmax.xlane.f32.xlu0 %v1068_v5 }
 0x961   :  { %1156 = vmax.xlane.f32.xlu0 %v1155_v9 }
 0x96e   :  { %v905_v11 = vpop.xlane.xlu0 %904 }
 0x96f   :  { %v907_v12 = vmul.f32 %v905_v11, %v2331_v24 }
 0x971   :  { %2126 = vrsqrt.f32 %v907_v12  ;;  %vm927_vm5 = vcmp.eq.f32.partialorder %v907_v12, inf  ;;  %v930_v23 = vand.u32 2147483648, %v907_v12  ;;  %vm929_vm6 = vcmp.eq.f32.partialorder %v907_v12, 0.0 }
 0x975   :  { %1483 = vrot.lane.b32.xlu0 %v2641_v18, %s2227_s15 }
 0x977   :  { %v2127_v14 = vpop.eup %2126 }
 0x978   :  { %v921_v15 = vmul.f32 %v2127_v14, %v907_v12 }
 0x97a   :  { %v922_v16 = vmul.f32 %v2127_v14, %v921_v15 }
 0x97c   :  { %v923_v17 = vmul.f32 0.5, %v922_v16 }
 0x97e   :  { %v924_v20 = vsub.f32 1.5, %v923_v17 }
 0x980   :  { %v925_v0 = vmul.f32 %v2127_v14, %v924_v20 }
 0x981   :  { %v1095_v21 = vpop.permute.xlu0 %1094 }
 0x982   :  { %v926_v22 = vmul.f32 %v925_v0, %v907_v12  ;;  %2005 = vmatpush.msk.msra.mxu1 %vm1100_vm1, %v1095_v21 }
 0x984   :  { %v928_v25 = vsel %vm927_vm5, %v907_v12, %v926_v22 }
 0x985   :  { %v931_v26 = vsel %vm929_vm6, %v930_v23, %v928_v25 }
 0x986   :  { %v933_v27 = vadd.f32 1e-06, %v931_v26  ;;  %v1296_v26 = vpop.permute.xlu1 %1295 }
 0x988   :  { %2128 = vrcp.f32 %v933_v27  ;;  %v960_v31 = vand.u32 2147483648, %v933_v27  ;;  %v958_v33 = vand.u32 2147483647, %v933_v27  ;;  %vm954_vm8 = vweird.f32 %v933_v27 }
 0x989   :  { %v1093_v28 = vpop.permute.xlu0 %1092 }
 0x98a   :  { %1118 = vmatpush.msra.mxu1 %v1093_v28  ;;  %v961_v34 = vor.u32 1.1754944e-38, %v960_v31  ;;  %vm959_vm11 = vcmp.eq.f32.partialorder %v958_v33, 8.507059e+37 }
 0x98e   :  { %v2129_v49 = vpop.eup %2128 }
 0x98f   :  { %v950_v59 = vmul.f32 %v2129_v49, %v933_v27  ;;  %vm955_vm7 = vweird.f32 %v2129_v49 }
 0x990   :  { %vm956_vm10 = vmor %vm954_vm8, %vm955_vm7 }
 0x991   :  { %v1214_v29 = vpop.permute.xlu0 %1213  ;;  %v951_v30 = vsub.f32 1.0, %v950_v59 }
 0x992   :  { %2012 = vmatpush.xpose.msk.msrb.mxu1 %vm196_vm9, %v1214_v29 }
 0x993   :  { %v952_v32 = vmul.f32 %v2129_v49, %v951_v30 }
 0x995   :  { %v953_v51 = vadd.f32 %v2129_v49, %v952_v32 }
 0x997   :  { %v957_v36 = vsel %vm956_vm10, %v2129_v49, %v953_v51 }
 0x998   :  { %v962_v37 = vsel %vm959_vm11, %v961_v34, %v957_v36 }
 0x999   :  { %v1212_v38 = vpop.permute.xlu0 %1211  ;;  %v963_v39 = vmul.f32 %v962_v37, %v2618_v60 }
 0x99a   :  { %2013 = vmatpush.xpose.msk.msrb.mxu1 %vm196_vm9, %v1212_v38 }
 0x99b   :  { %1998 = vmatmul.msk.f32.gmra.mxu0 %vm67_vm0, %v963_v39 }
 0x9a1   :  { %v2650_v40 = vpop.permute.xlu0 %1209 }
 0x9cc   :  { %v1070_v41 = vpop.xlane.xlu0 %1069 }
 0x9cd   :  { %v1071_v42 = vsub.f32 %v1064_v4, %v1070_v41 }
 0x9cf   :  { %v1072_v47 = vmul.f32 1.442695, %v1071_v42 }
 0x9d1   :  { %2130 = vpow2.f32 %v1072_v47 }
 0x9d4   :  { %v1157_v19 = vpop.xlane.xlu0 %1156 }
 0x9d5   :  { %v1158_v48 = vsub.f32 %v1152_v7, %v1157_v19 }
 0x9d7   :  { %v2131_v50 = vpop.eup %2130  ;;  %v1159_v35 = vmul.f32 1.442695, %v1158_v48 }
 0x9d8   :  { %v1074_v54 = vsel %vm1067_vm2, %v2131_v50, 0.0 }
 0x9d9   :  { %2132 = vpow2.f32 %v1159_v35  ;;  %1075 = vadd.xlane.f32.xlu2 %v1074_v54 }
 0x9df   :  { %v2133_v56 = vpop.eup %2132 }
 0x9e0   :  { %v1161_v45 = vsel %vm1067_vm2, %v2133_v56, 0.0 }
 0x9e1   :  { %1162 = vadd.xlane.f32.xlu0 %v1161_v45 }
 0x9e7   :  { %v1484_v58 = vpop.permute.xlu0 %1483 }
 0x9f1   :  { %1571 = vrot.lane.b32.xlu2 %v2596_v53, %s2231_s21 }
 0x9f5   :  { %1657 = vrot.lane.b32.xlu0 %v2596_v53, %s2235_s27 }
 0x9f9   :  { %1655 = vrot.lane.b32.xlu2 %v2641_v18, %s2235_s27 }
 0xa18   :  { %v995_v57 = vpop.f32.mrf.mxu0 }
 0xa19   :  { %v996_v52 = vadd.f32 %v2589_v46, %v995_v57 }
 0xa1b   :  { %1481 = vrot.lane.b32.xlu1 %v996_v52, %s2227_s15  ;;  %1567 = vrot.lane.b32.xlu0 %v996_v52, %s2231_s21 }
 0xa23   :  { %1569 = vrot.lane.b32.xlu1 %v2641_v18, %s2231_s21 }
 0xa2b   :  { %1653 = vrot.lane.b32.xlu1 %v996_v52, %s2235_s27 }
 0xa4c   :  { %v1076_v60 = vpop.xlane.xlu2 %1075 }
 0xa4d   :  { %2134 = vrcp.f32 %v1076_v60  ;;  %v1088_v2 = vand.u32 2147483648, %v1076_v60  ;;  %v1086_v3 = vand.u32 2147483647, %v1076_v60  ;;  %vm1082_vm13 = vweird.f32 %v1076_v60 }
 0xa4f   :  { %v1089_v7 = vor.u32 1.1754944e-38, %v1088_v2  ;;  %vm1087_vm15 = vcmp.eq.f32.partialorder %v1086_v3, 8.507059e+37 }
 0xa53   :  { %v2135_v61 = vpop.eup %2134 }
 0xa54   :  { %v1078_v62 = vmul.f32 %v2135_v61, %v1076_v60  ;;  %v1163_v63 = vpop.xlane.xlu0 %1162  ;;  %vm1083_vm12 = vweird.f32 %v2135_v61  ;;  %v1572_v25 = vpop.permute.xlu2 %1571 }
 0xa55   :  { %2136 = vrcp.f32 %v1163_v63  ;;  %vm1084_vm14 = vmor %vm1082_vm13, %vm1083_vm12  ;;  %v1175_v15 = vand.u32 2147483648, %v1163_v63  ;;  %v1173_v17 = vand.u32 2147483647, %v1163_v63  ;;  %vm1169_vm6 = vweird.f32 %v1163_v63 }
 0xa56   :  { %v1079_v1 = vsub.f32 1.0, %v1078_v62 }
 0xa57   :  { %v1176_v0 = vor.u32 1.1754944e-38, %v1175_v15  ;;  %vm1174_vm8 = vcmp.eq.f32.partialorder %v1173_v17, 8.507059e+37 }
 0xa58   :  { %v1080_v46 = vmul.f32 %v2135_v61, %v1079_v1 }
 0xa5a   :  { %v1081_v4 = vadd.f32 %v2135_v61, %v1080_v46 }
 0xa5b   :  { %v2137_v5 = vpop.eup %2136 }
 0xa5c   :  { %v1085_v9 = vsel %vm1084_vm14, %v2135_v61, %v1081_v4  ;;  %v1165_v11 = vmul.f32 %v2137_v5, %v1163_v63  ;;  %vm1170_vm5 = vweird.f32 %v2137_v5  ;;  %v1656_v28 = vpop.permute.xlu2 %1655 }
 0xa5d   :  { %v1090_v12 = vsel %vm1087_vm15, %v1089_v7, %v1085_v9  ;;  %vm1171_vm7 = vmor %vm1169_vm6, %vm1170_vm5 }
 0xa5e   :  { %v1166_v13 = vsub.f32 1.0, %v1165_v11  ;;  %v1091_v14 = vmul.f32 %v2131_v50, %v1090_v12 }
 0xa60   :  { %v1167_v16 = vmul.f32 %v2137_v5, %v1166_v13  ;;  %2006 = vmatmul.msk.f32.vlgmr.msra.gmra.mxu1 %vm1067_vm2, %v1091_v14 }
 0xa61   :  { %2022 = vmatpush.xpose.msk.msra.mxu1 %vm196_vm9, %v2596_v53 }
 0xa62   :  { %v1168_v20 = vadd.f32 %v2137_v5, %v1167_v16 }
 0xa64   :  { %v1172_v21 = vsel %vm1171_vm7, %v2137_v5, %v1168_v20 }
 0xa65   :  { %v1177_v22 = vsel %vm1174_vm8, %v1176_v0, %v1172_v21  ;;  %2023 = vmatpush.xpose.msk.msra.mxu1 %vm196_vm9, %v2641_v18 }
 0xa66   :  { %v1178_v23 = vmul.f32 %v2133_v56, %v1177_v22 }
 0xa67   :  { %v1658_v27 = vpop.permute.xlu0 %1657 }
 0xa68   :  { %2011 = vmatmul.msk.f32.vlgmr.msra.gmra.mxu0 %vm1067_vm2, %v1178_v23  ;;  %2014 = vmatmul.msk.f32.vlgmr.msrb.gmra.mxu1 %vm196_vm9, %v2650_v40 }
 0xa69   :  { %2027 = vmatpush.xpose.msk.msra.mxu0 %vm196_vm9, %v1486_v6  ;;  %2032 = vmatpush.xpose.msk.msrb.mxu1 %vm196_vm9, %v1572_v25 }
 0xa6d   :  { %2028 = vmatpush.xpose.msk.msra.mxu0 %vm196_vm9, %v1484_v58 }
 0xa70   :  { %2019 = vmatmul.msk.f32.vlgmr.msrb.gmra.mxu0 %vm196_vm9, %v1296_v26  ;;  %2024 = vmatmul.msk.f32.vlgmr.msra.gmra.mxu1 %vm196_vm9, %v996_v52 }
 0xa71   :  { %2037 = vmatpush.xpose.msk.msrb.mxu0 %vm196_vm9, %v1658_v27 }
 0xa75   :  { %2038 = vmatpush.xpose.msk.msrb.mxu0 %vm196_vm9, %v1656_v28 }
 0xa8d   :  { %v1482_v49 = vpop.permute.xlu1 %1481  ;;  %v1568_v29 = vpop.permute.xlu0 %1567 }
 0xa8e   :  { %2029 = vmatmul.msk.f32.vlgmr.msra.gmra.mxu0 %vm196_vm9, %v1482_v49 }
 0xa95   :  { %v1570_v59 = vpop.permute.xlu1 %1569 }
 0xa96   :  { %2033 = vmatpush.xpose.msk.msrb.mxu1 %vm196_vm9, %v1570_v59 }
 0xa99   :  { %2034 = vmatmul.msk.f32.vlgmr.msrb.gmra.mxu1 %vm196_vm9, %v1568_v29 }
 0xa9d   :  { %v1654_v30 = vpop.permute.xlu1 %1653 }
 0xa9e   :  { %2039 = vmatmul.msk.f32.vlgmr.msrb.gmra.mxu0 %vm196_vm9, %v1654_v30 }
 0xadd   :  { %v2685_v31 = vpop.f32.mrf.mxu1 }
 0xae5   :  { %v1238_v32 = vpop.f32.mrf.mxu1  ;;  %v2689_v36 = vpop.f32.mrf.mxu0 }
 0xae6   :  { %v1241_v33 = vsel %vm1067_vm2, %v1238_v32, -inf }
 0xae7   :  { %1242 = vmax.xlane.f32.xlu2 %v1241_v33 }
 0xaed   :  { %v1424_v51 = vpop.f32.mrf.mxu1  ;;  %v1324_v37 = vpop.f32.mrf.mxu0 }
 0xaee   :  { %v1427_v34 = vsel %vm1067_vm2, %v1424_v51, -inf  ;;  %v1327_v47 = vsel %vm1067_vm2, %v1324_v37, -inf }
 0xaef   :  { %1428 = vmax.xlane.f32.xlu1 %v1427_v34 }
 0xb0b   :  { %v2691_v38 = vpop.f32.mrf.mxu0 }
 0xb0c   :  { %v1513_v6 = vsel %vm1067_vm2, %v2691_v38, -inf }
 0xb16   :  { %v1596_v39 = vpop.f32.mrf.mxu1 }
 0xb17   :  { %v1599_v40 = vsel %vm1067_vm2, %v1596_v39, -inf }
 0xb18   :  { %1600 = vmax.xlane.f32.xlu0 %v1599_v40 }
 0xb1b   :  { %v2694_v41 = vpop.f32.mrf.mxu0 }
 0xb1c   :  { %v1685_v42 = vsel %vm1067_vm2, %v2694_v41, -inf }
 0xb1d   :  { %1686 = vmax.xlane.f32.xlu1 %v1685_v42 }
 0xb20   :  { %1328 = vmax.xlane.f32.xlu0 %v1327_v47 }
 0xb34   :  { %1353 = vrot.lane.b32.xlu0 %v2574_v43, %s2233_s8 }
 0xb3c   :  { %1351 = vrot.lane.b32.xlu0 %v2580_v44, %s2233_s8 }
 0xb44   :  { %1539 = vrot.lane.b32.xlu0 %v2596_v53, %s2229_s17 }
 0xb4c   :  { %1625 = vrot.lane.b32.xlu0 %v2596_v53, %s2234_s26 }
 0xb5a   :  { %v1243_v19 = vpop.xlane.xlu2 %1242 }
 0xb5b   :  { %v1244_v48 = vsub.f32 %v1238_v32, %v1243_v19 }
 0xb5d   :  { %v1245_v50 = vmul.f32 1.442695, %v1244_v48 }
 0xb5f   :  { %2138 = vpow2.f32 %v1245_v50 }
 0xb62   :  { %v1429_v35 = vpop.xlane.xlu1 %1428 }
 0xb63   :  { %v1430_v54 = vsub.f32 %v1424_v51, %v1429_v35 }
 0xb65   :  { %v2707_v56 = vpop.eup %2138  ;;  %v1431_v45 = vmul.f32 1.442695, %v1430_v54 }
 0xb66   :  { %v1247_v57 = vsel %vm1067_vm2, %v2707_v56, 0.0 }
 0xb67   :  { %2140 = vpow2.f32 %v1431_v45  ;;  %1248 = vadd.xlane.f32.xlu2 %v1247_v57 }
 0xb6d   :  { %v2711_v52 = vpop.eup %2140 }
 0xb6e   :  { %v1433_v58 = vsel %vm1067_vm2, %v2711_v52, 0.0 }
 0xb6f   :  { %1514 = vmax.xlane.f32.xlu2 %v1513_v6  ;;  %1434 = vadd.xlane.f32.xlu1 %v1433_v58 }
 0xb87   :  { %1265 = vrot.lane.b32.xlu2 %v2580_v44, %s2234_s26 }
 0xb88   :  { %1267 = vrot.lane.b32.xlu1 %v2574_v43, %s2234_s26 }
 0xb8b   :  { %v1601_v60 = vpop.xlane.xlu0 %1600 }
 0xb8c   :  { %v1602_v61 = vsub.f32 %v1596_v39, %v1601_v60 }
 0xb8e   :  { %v1603_v62 = vmul.f32 1.442695, %v1602_v61 }
 0xb8f   :  { %1451 = vrot.lane.b32.xlu2 %v2641_v18, %s2228_s16 }
 0xb90   :  { %2142 = vpow2.f32 %v1603_v62  ;;  %1453 = vrot.lane.b32.xlu1 %v2596_v53, %s2228_s16  ;;  %v1687_v9 = vpop.xlane.xlu1 %1686 }
 0xb91   :  { %v1688_v16 = vsub.f32 %v2694_v41, %v1687_v9 }
 0xb93   :  { %v1329_v63 = vpop.xlane.xlu0 %1328  ;;  %v1689_v0 = vmul.f32 1.442695, %v1688_v16 }
 0xb94   :  { %v1330_v1 = vsub.f32 %v1324_v37, %v1329_v63 }
 0xb96   :  { %v2725_v2 = vpop.eup %2142  ;;  %v1331_v46 = vmul.f32 1.442695, %v1330_v1 }
 0xb97   :  { %v1605_v44 = vsel %vm1067_vm2, %v2725_v2, 0.0 }
 0xb98   :  { %2144 = vpow2.f32 %v1331_v46  ;;  %1606 = vadd.xlane.f32.xlu0 %v1605_v44  ;;  %1537 = vrot.lane.b32.xlu1 %v2641_v18, %s2229_s17 }
 0xb9e   :  { %v2731_v43 = vpop.eup %2144 }
 0xb9f   :  { %v1333_v3 = vsel %vm1067_vm2, %v2731_v43, 0.0 }
 0xba0   :  { %1334 = vadd.xlane.f32.xlu0 %v1333_v3  ;;  %1623 = vrot.lane.b32.xlu1 %v2641_v18, %s2234_s26 }
 0xba6   :  { %v1354_v4 = vpop.permute.xlu0 %1353 }
 0xba7   :  { %2020 = vmatpush.msk.msrb.mxu2 %vm1100_vm1, %v1354_v4 }
 0xbae   :  { %v1352_v5 = vpop.permute.xlu0 %1351 }
 0xbaf   :  { %1376 = vmatpush.msrb.mxu2 %v1352_v5 }
 0xbb4   :  { %1709 = vrot.lane.b32.xlu0 %v2641_v18, %s2233_s8 }
 0xbb6   :  { %v1540_v7 = vpop.permute.xlu0 %1539 }
 0xbb7   :  { %2030 = vmatpush.msk.msra.mxu2 %vm1100_vm1, %v1540_v7 }
 0xbbe   :  { %v1626_v35 = vpop.permute.xlu0 %1625 }
 0xbda   :  { %v1249_v11 = vpop.xlane.xlu2 %1248 }
 0xbdb   :  { %2146 = vrcp.f32 %v1249_v11  ;;  %v1261_v59 = vand.u32 2147483648, %v1249_v11  ;;  %vm1255_vm11 = vweird.f32 %v1249_v11  ;;  %v1259_v29 = vand.u32 2147483647, %v1249_v11 }
 0xbdd   :  { %v1262_v51 = vor.u32 1.1754944e-38, %v1261_v59  ;;  %vm1260_vm13 = vcmp.eq.f32.partialorder %v1259_v29, 8.507059e+37 }
 0xbe1   :  { %v2147_v14 = vpop.eup %2146 }
 0xbe2   :  { %v1515_v12 = vpop.xlane.xlu2 %1514  ;;  %v1435_v13 = vpop.xlane.xlu1 %1434  ;;  %v1251_v20 = vmul.f32 %v2147_v14, %v1249_v11  ;;  %vm1256_vm10 = vweird.f32 %v2147_v14 }
 0xbe3   :  { %v1516_v15 = vsub.f32 %v2691_v38, %v1515_v12  ;;  %2148 = vrcp.f32 %v1435_v13  ;;  %vm1257_vm12 = vmor %vm1255_vm11, %vm1256_vm10  ;;  %v1447_v40 = vand.u32 2147483648, %v1435_v13  ;;  %vm1441_vm15 = vweird.f32 %v1435_v13 }
 0xbe4   :  { %v1252_v21 = vsub.f32 1.0, %v1251_v20  ;;  %v1445_v41 = vand.u32 2147483647, %v1435_v13 }
 0xbe5   :  { %v1517_v17 = vmul.f32 1.442695, %v1516_v15  ;;  %v1448_v19 = vor.u32 1.1754944e-38, %v1447_v40 }
 0xbe6   :  { %v1253_v23 = vmul.f32 %v2147_v14, %v1252_v21  ;;  %vm1446_vm6 = vcmp.eq.f32.partialorder %v1445_v41, 8.507059e+37 }
 0xbe7   :  { %2150 = vpow2.f32 %v1517_v17 }
 0xbe8   :  { %2152 = vpow2.f32 %v1689_v0  ;;  %v1254_v27 = vadd.f32 %v2147_v14, %v1253_v23 }
 0xbe9   :  { %v2149_v18 = vpop.eup %2148 }
 0xbea   :  { %v1437_v25 = vmul.f32 %v2149_v18, %v1435_v13  ;;  %v1258_v30 = vsel %vm1257_vm12, %v2147_v14, %v1254_v27  ;;  %vm1442_vm14 = vweird.f32 %v2149_v18  ;;  %v1266_v38 = vpop.permute.xlu2 %1265 }
 0xbeb   :  { %v1263_v34 = vsel %vm1260_vm13, %v1262_v51, %v1258_v30  ;;  %vm1443_vm5 = vmor %vm1441_vm15, %vm1442_vm14 }
 0xbec   :  { %v1438_v28 = vsub.f32 1.0, %v1437_v25  ;;  %v1264_v42 = vmul.f32 %v2707_v56, %v1263_v34 }
 0xbed   :  { %v2743_v22 = vpop.eup %2150 }
 0xbee   :  { %v1519_v26 = vsel %vm1067_vm2, %v2743_v22, 0.0  ;;  %v2747_v49 = vpop.eup %2152  ;;  %v1439_v32 = vmul.f32 %v2149_v18, %v1438_v28 }
 0xbef   :  { %1520 = vadd.xlane.f32.xlu2 %v1519_v26  ;;  %v1691_v33 = vsel %vm1067_vm2, %v2747_v49, 0.0 }
 0xbf0   :  { %v1440_v37 = vadd.f32 %v2149_v18, %v1439_v32 }
 0xbf2   :  { %v1444_v47 = vsel %vm1443_vm5, %v2149_v18, %v1440_v37  ;;  %v1452_v54 = vpop.permute.xlu2 %1451 }
 0xbf3   :  { %v1449_v48 = vsel %vm1446_vm6, %v1448_v19, %v1444_v47 }
 0xbf4   :  { %v1450_v45 = vmul.f32 %v2711_v52, %v1449_v48 }
 0xbf7   :  { %1692 = vadd.xlane.f32.xlu2 %v1691_v33 }
 0xbfa   :  { %v1268_v39 = vpop.permute.xlu1 %1267 }
 0xbfb   :  { %2015 = vmatpush.msk.msra.mxu3 %vm1100_vm1, %v1268_v39 }
 0xbfd   :  { %1290 = vmatpush.msra.mxu3 %v1266_v38 }
 0xbfe   :  { %2016 = vmatmul.msk.f32.vlgmr.msra.gmra.mxu3 %vm1067_vm2, %v1264_v42 }
 0xc02   :  { %v1454_v50 = vpop.permute.xlu1 %1453 }
 0xc03   :  { %2025 = vmatpush.msk.msrb.mxu3 %vm1100_vm1, %v1454_v50 }
 0xc05   :  { %1476 = vmatpush.msrb.mxu3 %v1452_v54  ;;  %v1757_v54 = vld [vmem:[%s2872_s7 + $0x18] sm:$0xff] }
 0xc06   :  { %2026 = vmatmul.msk.f32.vlgmr.msrb.gmra.mxu3 %vm1067_vm2, %v1450_v45  ;;  %1776 = vmatpush.msra.mxu1 %v1757_v54  ;;  %v1755_v45 = vld [vmem:[%s2872_s7 + $0x8] sm:$0xff] }
 0xc07   :  { %2035 = vmatpush.msk.msra.mxu3 %vm1100_vm1, %v1626_v35 }
 0xc0a   :  { %v1538_v56 = vpop.permute.xlu1 %1537 }
 0xc0b   :  { %v1607_v57 = vpop.xlane.xlu0 %1606  ;;  %1562 = vmatpush.msra.mxu2 %v1538_v56 }
 0xc0c   :  { %2154 = vrcp.f32 %v1607_v57  ;;  %v1619_v52 = vand.u32 2147483648, %v1607_v57  ;;  %v1617_v1 = vand.u32 2147483647, %v1607_v57  ;;  %vm1613_vm8 = vweird.f32 %v1607_v57 }
 0xc0e   :  { %v1620_v3 = vor.u32 1.1754944e-38, %v1619_v52  ;;  %vm1618_vm11 = vcmp.eq.f32.partialorder %v1617_v1, 8.507059e+37 }
 0xc0f   :  { %1711 = vrot.lane.b32.xlu2 %v2596_v53, %s2233_s8 }
 0xc12   :  { %v2155_v6 = vpop.eup %2154  ;;  %v1624_v58 = vpop.permute.xlu1 %1623 }
 0xc13   :  { %v1609_v60 = vmul.f32 %v2155_v6, %v1607_v57  ;;  %v1335_v61 = vpop.xlane.xlu0 %1334  ;;  %1648 = vmatpush.msra.mxu3 %v1624_v58  ;;  %vm1614_vm7 = vweird.f32 %v2155_v6  ;;  %v1754_v57 = vld [vmem:[%s2872_s7] sm:$0xff] }
 0xc14   :  { %2156 = vrcp.f32 %v1335_v61  ;;  %vm1615_vm10 = vmor %vm1613_vm8, %vm1614_vm7  ;;  %v1347_v11 = vand.u32 2147483648, %v1335_v61  ;;  %v1345_v13 = vand.u32 2147483647, %v1335_v61  ;;  %vm1341_vm13 = vweird.f32 %v1335_v61 }
 0xc15   :  { %v1610_v62 = vsub.f32 1.0, %v1609_v60 }
 0xc16   :  { %vm1346_vm15 = vcmp.eq.f32.partialorder %v1345_v13, 8.507059e+37 }
 0xc17   :  { %v1611_v63 = vmul.f32 %v2155_v6, %v1610_v62  ;;  %1382 = vrot.lane.b32.xlu2 %v2689_v36, %s2224_s23  ;;  %v1348_v36 = vor.u32 1.1754944e-38, %v1347_v11 }
 0xc19   :  { %v1612_v46 = vadd.f32 %v2155_v6, %v1611_v63 }
 0xc1a   :  { %v2157_v44 = vpop.eup %2156 }
 0xc1b   :  { %v1616_v53 = vsel %vm1615_vm10, %v2155_v6, %v1612_v46  ;;  %v1337_v4 = vmul.f32 %v2157_v44, %v1335_v61  ;;  %vm1342_vm12 = vweird.f32 %v2157_v44 }
 0xc1c   :  { %v1621_v5 = vsel %vm1618_vm11, %v1620_v3, %v1616_v53  ;;  %vm1343_vm14 = vmor %vm1341_vm13, %vm1342_vm12 }
 0xc1d   :  { %v1338_v7 = vsub.f32 1.0, %v1337_v4  ;;  %v1622_v9 = vmul.f32 %v2725_v2, %v1621_v5 }
 0xc1f   :  { %v1339_v12 = vmul.f32 %v2157_v44, %v1338_v7  ;;  %2036 = vmatmul.msk.f32.vlgmr.msra.gmra.mxu3 %vm1067_vm2, %v1622_v9 }
 0xc21   :  { %v1340_v14 = vadd.f32 %v2157_v44, %v1339_v12 }
 0xc23   :  { %v1344_v15 = vsel %vm1343_vm14, %v2157_v44, %v1340_v14 }
 0xc24   :  { %v1349_v16 = vsel %vm1346_vm15, %v1348_v36, %v1344_v15 }
 0xc25   :  { %v1350_v17 = vmul.f32 %v2731_v43, %v1349_v16 }
 0xc26   :  { %v1710_v33 = vpop.permute.xlu0 %1709 }
 0xc27   :  { %2021 = vmatmul.msk.f32.vlgmr.msrb.gmra.mxu2 %vm1067_vm2, %v1350_v17 }
 0xc62   :  { %v1521_v20 = vpop.xlane.xlu2 %1520 }
 0xc63   :  { %2158 = vrcp.f32 %v1521_v20  ;;  %v1533_v23 = vand.u32 2147483648, %v1521_v20  ;;  %v1531_v26 = vand.u32 2147483647, %v1521_v20  ;;  %vm1527_vm6 = vweird.f32 %v1521_v20 }
 0xc65   :  { %v1534_v59 = vor.u32 1.1754944e-38, %v1533_v23  ;;  %vm1532_vm8 = vcmp.eq.f32.partialorder %v1531_v26, 8.507059e+37  ;;  %v1871_v23 = vld [vmem:[#allocation2 + $0x18] sm:$0xff]  ;;  %v1869_v26 = vld [vmem:[#allocation2 + $0x8] sm:$0xff] }
 0xc66   :  { %1891 = vmatpush.msrb.mxu3 %v1871_v23 }
 0xc69   :  { %v2159_v2 = vpop.eup %2158 }
 0xc6a   :  { %v1523_v0 = vmul.f32 %v2159_v2, %v1521_v20  ;;  %v1693_v21 = vpop.xlane.xlu2 %1692  ;;  %vm1528_vm5 = vweird.f32 %v2159_v2 }
 0xc6b   :  { %2160 = vrcp.f32 %v1693_v21  ;;  %vm1529_vm7 = vmor %vm1527_vm6, %vm1528_vm5  ;;  %v1705_v37 = vand.u32 2147483648, %v1693_v21  ;;  %v1703_v39 = vand.u32 2147483647, %v1693_v21  ;;  %vm1699_vm11 = vweird.f32 %v1693_v21 }
 0xc6c   :  { %v1524_v18 = vsub.f32 1.0, %v1523_v0 }
 0xc6d   :  { %v1706_v41 = vor.u32 1.1754944e-38, %v1705_v37  ;;  %vm1704_vm13 = vcmp.eq.f32.partialorder %v1703_v39, 8.507059e+37 }
 0xc6e   :  { %v1525_v25 = vmul.f32 %v2159_v2, %v1524_v18 }
 0xc70   :  { %v1526_v27 = vadd.f32 %v2159_v2, %v1525_v25  ;;  %v1870_v25 = vld [vmem:[#allocation2 + $0x10] sm:$0xff] }
 0xc71   :  { %v2161_v28 = vpop.eup %2160  ;;  %1892 = vmatpush.msrb.mxu3 %v1870_v25 }
 0xc72   :  { %v1530_v29 = vsel %vm1529_vm7, %v2159_v2, %v1526_v27  ;;  %v1695_v43 = vmul.f32 %v2161_v28, %v1693_v21  ;;  %v1712_v30 = vpop.permute.xlu2 %1711  ;;  %vm1700_vm10 = vweird.f32 %v2161_v28  ;;  %v1868_v27 = vld [vmem:[#allocation2] sm:$0xff] }
 0xc73   :  { %v1535_v32 = vsel %vm1532_vm8, %v1534_v59, %v1530_v29  ;;  %2040 = vmatpush.msk.msrb.mxu2 %vm1100_vm1, %v1712_v30  ;;  %vm1701_vm12 = vmor %vm1699_vm11, %vm1700_vm10  ;;  %1893 = vmatpush.msrb.mxu3 %v1869_v26  ;;  %vm1912_vm11 = vcmask 523264  }
 0xc74   :  { %v1696_v51 = vsub.f32 1.0, %v1695_v43  ;;  %v1536_v34 = vmul.f32 %v2743_v22, %v1535_v32 }
 0xc75   :  { %1734 = vmatpush.msrb.mxu2 %v1710_v33  ;;  %1894 = vmatpush.msrb.mxu3 %v1868_v27 }
 0xc76   :  { %v1697_v38 = vmul.f32 %v2161_v28, %v1696_v51  ;;  %2031 = vmatmul.msk.f32.vlgmr.msra.gmra.mxu2 %vm1067_vm2, %v1536_v34 }
 0xc78   :  { %v1698_v40 = vadd.f32 %v2161_v28, %v1697_v38 }
 0xc7a   :  { %v1702_v42 = vsel %vm1701_vm12, %v2161_v28, %v1698_v40  ;;  %v1383_v58 = vpop.permute.xlu2 %1382 }
 0xc7b   :  { %v1707_v47 = vsel %vm1704_vm13, %v1706_v41, %v1702_v42  ;;  %v1393_v61 = vsel %vm196_vm9, %v2685_v31, %v1383_v58  ;;  %v2075_v31 = vld [vmem:[%s2875_s10 + $0x4] ss:$0 sm:$0xff] }
 0xc7c   :  { %v1708_v19 = vmul.f32 %v2747_v49, %v1707_v47  ;;  %v1756_v49 = vld [vmem:[%s2872_s7 + $0x10] sm:$0xff] }
 0xc7d   :  { %1777 = vmatpush.msra.mxu1 %v1756_v49 }
 0xc7e   :  { %2041 = vmatmul.msk.f32.vlgmr.msrb.gmra.mxu2 %vm1067_vm2, %v1708_v19 }
 0xc7f   :  { %1778 = vmatpush.msra.mxu1 %v1755_v45 }
 0xc81   :  { %v1292_v48 = vpop.f32.mrf.mxu3  ;;  %1779 = vmatpush.msra.mxu1 %v1754_v57 }
 0xc82   :  { %1386 = vrot.lane.b32.xlu1 %v1292_v48, %s2238_s30 }
 0xc89   :  { %v1478_v22 = vpop.f32.mrf.mxu3 }
 0xca2   :  { %v1650_v50 = vpop.f32.mrf.mxu3 }
 0xca3   :  { %1744 = vrot.lane.b32.xlu1 %v1650_v50, %s2238_s30  ;;  %s1955_s30 = sshll.u32 %s2876_s11, 4  ;;  %s1956_s30 = int_to_ptr.hbm [resolvable:$true] %s1955_s30 }
 0xcaa   :  { %v1378_v35 = vpop.f32.mrf.mxu2 }
 0xcab   :  { %1390 = vrot.lane.b32.xlu0 %v1378_v35, %s2239_s3 }
 0xcf4   :  { %v1387_v60 = vpop.permute.xlu1 %1386 }
 0xcf5   :  { %v1394_v62 = vsel %vm518_vm3, %v1393_v61, %v1387_v60  ;;  %v1911_v60 = vld [vmem:[%s2874_s9 + $0x38] sm:$0xff]  ;;  %v1910_v61 = vld [vmem:[%s2874_s9 + $0x30] sm:$0xff] }
 0xcf6   :  { %1927 = vmatpush.msra.mxu0 %v1911_v60 }
 0xcf8   :  { %1928 = vmatpush.msra.mxu0 %v1910_v61 }
 0xcf9   :  { %v1564_v56 = vpop.f32.mrf.mxu2 }
 0xcfa   :  { %1740 = vrot.lane.b32.xlu2 %v1564_v56, %s2224_s23 }
 0xd01   :  { %v1736_v6 = vpop.f32.mrf.mxu2 }
 0xd02   :  { %1748 = vrot.lane.b32.xlu0 %v1736_v6, %s2239_s3 }
 0xd15   :  { %v1745_v44 = vpop.permute.xlu1 %1744 }
 0xd1d   :  { %v1391_v52 = vpop.permute.xlu0 %1390 }
 0xd1e   :  { %v1395_v63 = vsel %vm520_vm4, %v1394_v62, %v1391_v52  ;;  %v1909_v52 = vld [vmem:[%s2874_s9 + $0x28] sm:$0xff] }
 0xd1f   :  { %2042 = vmatmul.msk.f32.vlgmr.msra.gmra.mxu1 %vm67_vm0, %v1395_v63  ;;  %1929 = vmatpush.msra.mxu0 %v1909_v52 }
 0xd54   :  { %v1741_v1 = vpop.permute.xlu2 %1740 }
 0xd55   :  { %v1751_v46 = vsel %vm196_vm9, %v1478_v22, %v1741_v1 }
 0xd56   :  { %v1752_v53 = vsel %vm518_vm3, %v1751_v46, %v1745_v44  ;;  %v1907_v46 = vld [vmem:[%s2874_s9 + $0x18] sm:$0xff] }
 0xd74   :  { %v1749_v3 = vpop.permute.xlu0 %1748 }
 0xd75   :  { %v1753_v4 = vsel %vm520_vm4, %v1752_v53, %v1749_v3 }
 0xd76   :  { %2043 = vmatmul.msk.f32.gmra.mxu1 %vm67_vm0, %v1753_v4 }
 0xd9c   :  { %v1781_v5 = vpop.f32.mrf.mxu1 }
 0xd9d   :  { %v1787_v7 = vadd.f32 %v1781_v5, %v2508_v10 }
 0xd9f   :  { %v2801_v9 = vadd.f32 %v2075_v31, %v1787_v7 }
 0xda1   :  { %v1792_v11 = vsel %vm67_vm0, %v2801_v9, 0.0 }
 0xda2   :  { %1793 = vadd.xlane.f32.xlu2 %v1792_v11 }
 0xdf3   :  { %v1784_v12 = vpop.f32.mrf.mxu1 }
 0xdf4   :  { %v1788_v13 = vadd.f32 %v1784_v12, %v2602_v55 }
 0xdf6   :  { %v2806_v14 = vadd.f32 %v2075_v31, %v1788_v13 }
 0xdf8   :  { %v1795_v36 = vsel %vm67_vm0, %v2806_v14, 0.0 }
 0xdf9   :  { %1796 = vadd.xlane.f32.xlu1 %v1795_v36 }
 0xe15   :  { %v1794_v15 = vpop.xlane.xlu2 %1793 }
 0xe16   :  { %v1798_v16 = vmul.f32 %v1794_v15, %v2314_v8 }
 0xe18   :  { %v1800_v10 = vsub.f32 %v2801_v9, %v1798_v16 }
 0xe1a   :  { %v1802_v17 = vmul.f32 %v1800_v10, %v1800_v10 }
 0xe1c   :  { %v1804_v20 = vsel %vm67_vm0, %v1802_v17, 0.0 }
 0xe1d   :  { %1805 = vadd.xlane.f32.xlu0 %v1804_v20 }
 0xe6c   :  { %v1797_v2 = vpop.xlane.xlu1 %1796 }
 0xe6d   :  { %v1799_v0 = vmul.f32 %v1797_v2, %v2314_v8  ;;  %v1906_v2 = vld [vmem:[%s2874_s9 + $0x10] sm:$0xff] }
 0xe6f   :  { %v2815_v55 = vsub.f32 %v2806_v14, %v1799_v0  ;;  %v1905_v0 = vld [vmem:[%s2874_s9 + $0x8] sm:$0xff] }
 0xe71   :  { %v1803_v21 = vmul.f32 %v2815_v55, %v2815_v55 }
 0xe73   :  { %v1807_v18 = vsel %vm67_vm0, %v1803_v21, 0.0  ;;  %v1904_v21 = vld [vmem:[%s2874_s9] sm:$0xff] }
 0xe74   :  { %1808 = vadd.xlane.f32.xlu2 %v1807_v18 }
 0xe90   :  { %v1806_v28 = vpop.xlane.xlu0 %1805 }
 0xe91   :  { %v1810_v59 = vmul.f32 %v1806_v28, %v2331_v24 }
 0xe93   :  { %2162 = vrsqrt.f32 %v1810_v59  ;;  %vm1819_vm9 = vcmp.eq.f32.partialorder %v1810_v59, inf  ;;  %v1822_v34 = vand.u32 2147483648, %v1810_v59  ;;  %vm1821_vm3 = vcmp.eq.f32.partialorder %v1810_v59, 0.0 }
 0xe99   :  { %v2163_v8 = vpop.eup %2162 }
 0xe9a   :  { %v1813_v29 = vmul.f32 %v2163_v8, %v1810_v59 }
 0xe9c   :  { %v1814_v43 = vmul.f32 %v2163_v8, %v1813_v29 }
 0xe9e   :  { %v1815_v30 = vmul.f32 0.5, %v1814_v43 }
 0xea0   :  { %v1816_v32 = vsub.f32 1.5, %v1815_v30 }
 0xea2   :  { %v1817_v33 = vmul.f32 %v2163_v8, %v1816_v32 }
 0xea4   :  { %v1818_v51 = vmul.f32 %v1817_v33, %v1810_v59 }
 0xea6   :  { %v1820_v37 = vsel %vm1819_vm9, %v1810_v59, %v1818_v51  ;;  %v2077_v59 = vld [vmem:[%s2875_s10 + $0x6] ss:$0 sm:$0xff] }
 0xea7   :  { %v1823_v38 = vsel %vm1821_vm3, %v1822_v34, %v1820_v37 }
 0xea8   :  { %v1836_v39 = vadd.f32 1e-06, %v1823_v38 }
 0xeaa   :  { %2164 = vrcp.f32 %v1836_v39  ;;  %v1849_v47 = vand.u32 2147483648, %v1836_v39  ;;  %v1847_v48 = vand.u32 2147483647, %v1836_v39  ;;  %vm1843_vm1 = vweird.f32 %v1836_v39 }
 0xeac   :  { %v1850_v50 = vor.u32 1.1754944e-38, %v1849_v47  ;;  %vm1848_vm14 = vcmp.eq.f32.partialorder %v1847_v48, 8.507059e+37 }
 0xeb0   :  { %v2165_v40 = vpop.eup %2164 }
 0xeb1   :  { %v1839_v41 = vmul.f32 %v2165_v40, %v1836_v39  ;;  %vm1844_vm4 = vweird.f32 %v2165_v40 }
 0xeb2   :  { %vm1845_vm2 = vmor %vm1843_vm1, %vm1844_vm4 }
 0xeb3   :  { %v1840_v42 = vsub.f32 1.0, %v1839_v41 }
 0xeb5   :  { %v1841_v19 = vmul.f32 %v2165_v40, %v1840_v42 }
 0xeb7   :  { %v1842_v22 = vadd.f32 %v2165_v40, %v1841_v19 }
 0xeb9   :  { %v1846_v35 = vsel %vm1845_vm2, %v2165_v40, %v1842_v22 }
 0xeba   :  { %v1851_v54 = vsel %vm1848_vm14, %v1850_v50, %v1846_v35 }
 0xebb   :  { %v1852_v49 = vmul.f32 %v1851_v54, %v1800_v10 }
 0xebd   :  { %2044 = vmatmul.msk.f32.vlgmr.msrb.gmra.mxu3 %vm67_vm0, %v1852_v49 }
 0xee7   :  { %v1809_v45 = vpop.xlane.xlu2 %1808 }
 0xee8   :  { %v1811_v56 = vmul.f32 %v1809_v45, %v2331_v24  ;;  %v1908_v24 = vld [vmem:[%s2874_s9 + $0x20] sm:$0xff]  ;;  %s2240_s9 = smov [#allocation5]  }
 0xee9   :  { %1930 = vmatpush.msra.mxu0 %v1908_v24  ;;  %s1953_s8 = sshll.u32 %s2240_s9, 4  ;;  %s1954_s8 = int_to_ptr.vmem [resolvable:$true] %s1953_s8 }
 0xeea   :  { %2166 = vrsqrt.f32 %v1811_v56  ;;  %vm1831_vm15 = vcmp.eq.f32.partialorder %v1811_v56, inf  ;;  %v1834_v3 = vand.u32 2147483648, %v1811_v56  ;;  %vm1833_vm5 = vcmp.eq.f32.partialorder %v1811_v56, 0.0 }
 0xeeb   :  { %1931 = vmatpush.msra.mxu0 %v1907_v46 }
 0xeed   :  { %1932 = vmatpush.msra.mxu0 %v1906_v2 }
 0xeef   :  { %1933 = vmatpush.msra.mxu0 %v1905_v0 }
 0xef0   :  { %v2167_v57 = vpop.eup %2166 }
 0xef1   :  { %v1825_v6 = vmul.f32 %v2167_v57, %v1811_v56  ;;  %1934 = vmatpush.msra.mxu0 %v1904_v21 }
 0xef3   :  { %v1826_v58 = vmul.f32 %v2167_v57, %v1825_v6 }
 0xef5   :  { %v1827_v62 = vmul.f32 0.5, %v1826_v58 }
 0xef7   :  { %v1828_v63 = vsub.f32 1.5, %v1827_v62 }
 0xef9   :  { %v1829_v1 = vmul.f32 %v2167_v57, %v1828_v63 }
 0xefb   :  { %v1830_v44 = vmul.f32 %v1829_v1, %v1811_v56 }
 0xefd   :  { %v1832_v53 = vsel %vm1831_vm15, %v1811_v56, %v1830_v44 }
 0xefe   :  { %v1835_v4 = vsel %vm1833_vm5, %v1834_v3, %v1832_v53 }
 0xeff   :  { %v1837_v31 = vadd.f32 1e-06, %v1835_v4 }
 0xf01   :  { %2168 = vrcp.f32 %v1837_v31  ;;  %v1864_v12 = vand.u32 2147483648, %v1837_v31  ;;  %v1862_v36 = vand.u32 2147483647, %v1837_v31  ;;  %vm1858_vm7 = vweird.f32 %v1837_v31 }
 0xf03   :  { %v1865_v16 = vor.u32 1.1754944e-38, %v1864_v12  ;;  %vm1863_vm10 = vcmp.eq.f32.partialorder %v1862_v36, 8.507059e+37 }
 0xf07   :  { %v2169_v5 = vpop.eup %2168 }
 0xf08   :  { %v1854_v7 = vmul.f32 %v2169_v5, %v1837_v31  ;;  %vm1859_vm6 = vweird.f32 %v2169_v5 }
 0xf09   :  { %vm1860_vm8 = vmor %vm1858_vm7, %vm1859_vm6 }
 0xf0a   :  { %v1855_v11 = vsub.f32 1.0, %v1854_v7 }
 0xf0c   :  { %v1856_v13 = vmul.f32 %v2169_v5, %v1855_v11 }
 0xf0e   :  { %v1857_v15 = vadd.f32 %v2169_v5, %v1856_v13 }
 0xf10   :  { %v1861_v10 = vsel %vm1860_vm8, %v2169_v5, %v1857_v15 }
 0xf11   :  { %v1866_v17 = vsel %vm1863_vm10, %v1865_v16, %v1861_v10 }
 0xf12   :  { %v1867_v20 = vmul.f32 %v1866_v17, %v2815_v55  ;;  %v2076_v55 = vld [vmem:[%s2875_s10 + $0x5] ss:$0 sm:$0xff] }
 0xf14   :  { %2045 = vmatmul.msk.f32.gmra.mxu3 %vm67_vm0, %v1867_v20 }
 0xf40   :  { %v1896_v18 = vpop.f32.mrf.mxu3 }
 0xf41   :  { %v1897_v23 = vadd.f32 %v2076_v55, %v1896_v18 }
 0xf43   :  { %v1902_v25 = vmax.f32 %v1897_v23, 0.0 }
 0xf45   :  { %2046 = vmatmul.msk.f32.vlgmr.msra.gmra.mxu0 %vm1912_vm11, %v1902_v25 }
 0xf97   :  { %v1899_v26 = vpop.f32.mrf.mxu3 }
 0xf98   :  { %v1900_v27 = vadd.f32 %v2076_v55, %v1899_v26 }
 0xf9a   :  { %v1903_v28 = vmax.f32 %v1900_v27, 0.0 }
 0xf9c   :  { %2047 = vmatmul.msk.f32.gmra.mxu0 %vm1912_vm11, %v1903_v28 }
 0xfc2   :  { %v1936_v8 = vpop.f32.mrf.mxu0 }
 0xfc3   :  { %v1942_v29 = vadd.f32 %v1936_v8, %v2801_v9 }
 0xfc5   :  { %v1945_v43 = vadd.f32 %v2077_v59, %v1942_v29 }
 0xfc7   :  { %1947 = vst.msk [vmem:[#allocation5] sm:$0xff] %vm67_vm0, %v1945_v43 }
0x1019   :  { %v1939_v30 = vpop.f32.mrf.mxu0 }
0x101a   :  { %v1943_v32 = vadd.f32 %v1939_v30, %v2806_v14 }
0x101c   :  { %v1946_v33 = vadd.f32 %v2077_v59, %v1943_v32 }
0x101e   :  { %1948 = vst.msk [vmem:[#allocation5 + $0x8] sm:$0xff] %vm67_vm0, %v1946_v33 }
0x101f   :  { %1961 = dma.vmem_to_hbm [thread:$0]  %s1954_s8, 256, %s1956_s30, [#allocation4], %s2223_s22, %s2223_s22, %s2224_s23  }
0x1020   :  { %2220 = dma.done.wait [#allocation4], 256  }
0x1021   :  { %2221 = vsyncadd [#allocation4], 4294967040 }
0x1022   :  { %1966 = vsyncpa [#allocation3], 1 }
0x1023   :  { %1967 = vsyncpa [#allocation4], 1 }

</bundles_post_ra>
